<compile_context>
chip_gen: v6e
topology: v6e:2x2x1
jax: 0.10.0
libtpu: 0.0.40
codegen_flags: <defaults>
</compile_context>

<pallas_src>
import jax
import jax.numpy as jnp
from jax import lax
from jax.experimental import pallas as pl
from jax.experimental.pallas import tpu as pltpu

BN_EPS = 1e-5
NEG_INF = float("-inf")


# ---------------------------------------------------------------------------
# Kernel 1: MaxPool2d(kernel_size=3, stride=2, padding=1)
# The input is pre-reshaped (metadata only) to (N*C, Ho, 2, Wo, 2) so that the
# stride-2 parity of H and W are explicit axes -> no strided loads / gathers
# are needed inside the kernel; only static slices, concats and max.
# ---------------------------------------------------------------------------
def _maxpool_kernel(x_ref, o_ref):
    v = x_ref[...]
    nc, ho, _, wo, _ = v.shape

    ee = v[:, :, 0:1, :, 0:1]   # x[2i,   2j]
    eo = v[:, :, 0:1, :, 1:2]   # x[2i,   2j+1]
    oe = v[:, :, 1:2, :, 0:1]   # x[2i+1, 2j]
    oo = v[:, :, 1:2, :, 1:2]   # x[2i+1, 2j+1]

    def shift_w(t):  # t[..., j, :] -> t[..., j-1, :]  (-inf at j == 0)
        pad = jnp.full((nc, ho, 1, 1, 1), NEG_INF, dtype=t.dtype)
        return jnp.concatenate([pad, t[:, :, :, : wo - 1, :]], axis=3)

    def shift_h(t):  # t[:, i, ...] -> t[:, i-1, ...]  (-inf at i == 0)
        pad = jnp.full((nc, 1, 1, wo, 1), NEG_INF, dtype=t.dtype)
        return jnp.concatenate([pad, t[:, : ho - 1, :, :, :]], axis=1)

    # max over input row 2i of the 3-wide column window
    row_even = jnp.maximum(jnp.maximum(ee, eo), shift_w(eo))
    # max over input row 2i+1 of the 3-wide column window
    row_odd = jnp.maximum(jnp.maximum(oe, oo), shift_w(oo))
    # add row 2i-1 (= row_odd of the previous output row)
    o_ref[...] = jnp.maximum(jnp.maximum(row_even, row_odd), shift_h(row_odd))


def _maxpool_3x3_s2_p1(x):
    """x: (N, C, H, W) -> (N, C, (H//2)*(W//2)); channels on sublanes, pixels on lanes."""
    N, C, H, W = x.shape
    assert H % 2 == 0 and W % 2 == 0, "even spatial dims expected"
    Ho, Wo = H // 2, W // 2
    xr = x.reshape(N * C, Ho, 2, Wo, 2)           # metadata-only reshape
    pooled = pl.pallas_call(
        _maxpool_kernel,
        out_shape=jax.ShapeDtypeStruct((N * C, Ho, 1, Wo, 1), x.dtype),
        in_specs=[pl.BlockSpec(memory_space=pltpu.MemorySpace.VMEM)],
        out_specs=pl.BlockSpec(memory_space=pltpu.MemorySpace.VMEM),
        compiler_params=pltpu.CompilerParams(vmem_limit_bytes=32 * 1024 * 1024),
    )(xr)
    return pooled.reshape(N, C, Ho * Wo)          # metadata-only reshape


# ---------------------------------------------------------------------------
# Kernel 2: ResidualBlock applied twice + bilinear resize to 19x19.
# Data layout inside the kernel: (N, C, HW) with HW on the lane axis.
# ---------------------------------------------------------------------------
def _resblock_interp_kernel(p_ref, gamma_ref, beta_ref, w_ref, b_ref, w2t_ref, o_ref):
    # p_ref:     (N, C, HW)      pooled features (VMEM)
    # gamma_ref: (1, C, 1)       BN scale (VMEM)
    # beta_ref:  (1, C, 1)       BN shift (VMEM)
    # w_ref:     (C, C)          1x1-conv weight, scalars in SMEM
    # b_ref:     (C,)            1x1-conv bias,   scalars in SMEM
    # w2t_ref:   (HW, OUT_HW)    bilinear-resize matrix (kron of 1-D interp mats)
    # o_ref:     (N, C, OUT_HW)
    h = p_ref[...].astype(jnp.float32)
    gamma = gamma_ref[...].astype(jnp.float32)
    beta = beta_ref[...].astype(jnp.float32)
    n, c, hw = h.shape
    inv_cnt = 1.0 / float(n * hw)

    def bn_relu(t):
        # training-mode BatchNorm2d: per-channel batch mean / biased variance,
        # one-pass sum / sumsq, folded into a single scale/shift FMA.
        s = jnp.sum(jnp.sum(t, axis=2, keepdims=True), axis=0, keepdims=True)        # (1,C,1)
        ss = jnp.sum(jnp.sum(t * t, axis=2, keepdims=True), axis=0, keepdims=True)   # (1,C,1)
        mean = s * inv_cnt
        var = ss * inv_cnt - mean * mean
        scale = gamma * lax.rsqrt(var + BN_EPS)   # rsqrt -> EUP slot
        shift = beta - mean * scale
        return jnp.maximum(t * scale + shift, 0.0)

    def conv1x1(t):
        # 1x1 conv unrolled as C x C broadcast FMAs on the VPU (C is tiny,
        # the MXU would be wasted on a (M,4)@(4,4) matmul).
        outs = []
        for co in range(c):
            acc = t[:, 0:1, :] * w_ref[co, 0]
            for ci in range(1, c):
                acc = acc + t[:, ci:ci + 1, :] * w_ref[co, ci]
            outs.append(acc + b_ref[co])
        return jnp.concatenate(outs, axis=1)      # (N, C, HW)

    def residual_block(t):
        y = t
        for _ in range(3):                        # same BN / conv module 3x
            t = conv1x1(bn_relu(t))
        return t + y

    h = residual_block(residual_block(h))         # same block applied twice

    # Bilinear resize (align_corners=False) as one matmul per image against the
    # precomputed (HW, OUT_HW) matrix; OUT_HW is lane-dense on the output store.
    w2t = w2t_ref[...].astype(jnp.float32)
    for i in range(n):
        o_ref[i] = jnp.dot(h[i], w2t, preferred_element_type=jnp.float32).astype(o_ref.dtype)


def _resblocks_and_resize(pooled, gamma, beta, conv_w, conv_b, resize_mat_t):
    N, C, HW = pooled.shape
    out_hw = resize_mat_t.shape[1]
    return pl.pallas_call(
        _resblock_interp_kernel,
        out_shape=jax.ShapeDtypeStruct((N, C, out_hw), pooled.dtype),
        in_specs=[
            pl.BlockSpec(memory_space=pltpu.MemorySpace.VMEM),   # pooled (N,C,HW)
            pl.BlockSpec(memory_space=pltpu.MemorySpace.VMEM),   # gamma (1,C,1)
            pl.BlockSpec(memory_space=pltpu.MemorySpace.VMEM),   # beta  (1,C,1)
            pl.BlockSpec(memory_space=pltpu.MemorySpace.SMEM),   # conv weight (C,C)
            pl.BlockSpec(memory_space=pltpu.MemorySpace.SMEM),   # conv bias (C,)
            pl.BlockSpec(memory_space=pltpu.MemorySpace.VMEM),   # resize matrix (HW,OUT_HW)
        ],
        out_specs=pl.BlockSpec(memory_space=pltpu.MemorySpace.VMEM),
        compiler_params=pltpu.CompilerParams(vmem_limit_bytes=32 * 1024 * 1024),
    )(pooled, gamma.reshape(1, C, 1), beta.reshape(1, C, 1),
      conv_w.reshape(C, C), conv_b.reshape(C), resize_mat_t)


# ---------------------------------------------------------------------------
# Host-side helpers (tiny, parameter-like constants; no tensor transposes).
# ---------------------------------------------------------------------------
def _bilinear_matrix(in_size, out_size, dtype=jnp.float32):
    """1-D interpolation matrix matching F.interpolate(bilinear, align_corners=False)."""
    scale = in_size / out_size
    dst = jnp.arange(out_size, dtype=jnp.float32)
    src = jnp.clip((dst + 0.5) * scale - 0.5, 0.0, float(in_size - 1))
    i0 = jnp.clip(jnp.floor(src).astype(jnp.int32), 0, in_size - 1)
    i1 = jnp.clip(i0 + 1, 0, in_size - 1)
    lam = src - i0.astype(jnp.float32)
    m = (jax.nn.one_hot(i0, in_size, dtype=jnp.float32) * (1.0 - lam)[:, None]
         + jax.nn.one_hot(i1, in_size, dtype=jnp.float32) * lam[:, None])
    return m.astype(dtype)


def mask_branch_forward(x, gamma, beta, conv_w, conv_b, out_size=(19, 19)):
    """x: (N, C, H, W) NCHW.  Returns (N, C, 19, 19)."""
    N, C, H, W = x.shape
    pooled = _maxpool_3x3_s2_p1(x)                       # (N, C, Hp*Wp)
    Hp, Wp = H // 2, W // 2
    m_h = _bilinear_matrix(Hp, out_size[0], x.dtype)     # (19, Hp)
    m_w = _bilinear_matrix(Wp, out_size[1], x.dtype)     # (19, Wp)
    w2 = jnp.kron(m_h, m_w)                              # (19*19, Hp*Wp)
    out = _resblocks_and_resize(pooled, gamma, beta, conv_w, conv_b, w2.T)
    return out.reshape(N, C, out_size[0], out_size[1])   # metadata-only reshape


# ---------------------------------------------------------------------------
# Pure-JAX reference with identical semantics (for the correctness check).
# ---------------------------------------------------------------------------
def _reference(x, gamma, beta, conv_w, conv_b, out_size=(19, 19)):
    N, C, H, W = x.shape
    xf = x.astype(jnp.float32)
    pooled = lax.reduce_window(
        xf, -jnp.inf, lax.max,
        window_dimensions=(1, 1, 3, 3), window_strides=(1, 1, 2, 2),
        padding=((0, 0), (0, 0), (1, 1), (1, 1)))
    g = gamma.reshape(1, C, 1, 1).astype(jnp.float32)
    bta = beta.reshape(1, C, 1, 1).astype(jnp.float32)
    w2d = conv_w.reshape(C, C).astype(jnp.float32)
    bb = conv_b.reshape(1, C, 1, 1).astype(jnp.float32)

    def bn_relu(h):
        mean = jnp.mean(h, axis=(0, 2, 3), keepdims=True)
        var = jnp.mean((h - mean) ** 2, axis=(0, 2, 3), keepdims=True)
        return jnp.maximum((h - mean) / jnp.sqrt(var + BN_EPS) * g + bta, 0.0)

    def conv(h):
        return jnp.einsum('oc,nchw->nohw', w2d, h) + bb

    def block(h):
        y = h
        for _ in range(3):
            h = conv(bn_relu(h))
        return h + y

    h = block(block(pooled))
    m_h = _bilinear_matrix(pooled.shape[2], out_size[0])
    m_w = _bilinear_matrix(pooled.shape[3], out_size[1])
    out = jnp.einsum('ia,jb,ncab->ncij', m_h, m_w, h)
    return out.astype(x.dtype)


if __name__ == "__main__":
    key = jax.random.PRNGKey(0)
    k_x, k_w, k_b, k_g, k_be = jax.random.split(key, 5)

    N, C, H, W = 2, 4, 16, 16
    x = jax.random.normal(k_x, (N, C, H, W), dtype=jnp.float32)

    # ResidualBlock parameters; the SAME BatchNorm and the SAME 1x1 conv are
    # reused for every stage inside the block and for both block applications.
    gamma = 1.0 + 0.1 * jax.random.normal(k_g, (C,), dtype=jnp.float32)
    beta = 0.1 * jax.random.normal(k_be, (C,), dtype=jnp.float32)
    bound = 1.0 / (C ** 0.5)
    conv_w = jax.random.uniform(k_w, (C, C, 1, 1), minval=-bound, maxval=bound,
                                dtype=jnp.float32)
    conv_b = jax.random.uniform(k_b, (C,), minval=-bound, maxval=bound,
                                dtype=jnp.float32)

    out = mask_branch_forward(x, gamma, beta, conv_w, conv_b)
    out = jax.block_until_ready(out)

    ref = _reference(x, gamma, beta, conv_w, conv_b)
    assert out.shape == (N, C, 19, 19)
    assert jnp.allclose(out, ref, atol=1e-4, rtol=1e-4), (
        "mismatch vs JAX reference, max abs diff = %g"
        % float(jnp.max(jnp.abs(out - ref))))

    print("KERNEL_OK")
</pallas_src>

<mosaic_0001>
module attributes {stable_mosaic.version = 11 : i64} {
  func.func @_maxpool_kernel(%arg0: memref<8x8x2x8x2xf32, #tpu.memory_space<vmem>>, %arg1: memref<8x8x1x8x1xf32, #tpu.memory_space<vmem>>) attributes {dimension_semantics = [], scalar_prefetch = 0 : i64, scratch_operands = 0 : i64, tpu.core_type = #tpu.core_type<tc>} {
    %c0 = arith.constant 0 : index
    %c0_0 = arith.constant 0 : index
    %c0_1 = arith.constant 0 : index
    %c0_2 = arith.constant 0 : index
    %c0_3 = arith.constant 0 : index
    %0 = vector.load %arg0[%c0, %c0_0, %c0_1, %c0_2, %c0_3] : memref<8x8x2x8x2xf32, #tpu.memory_space<vmem>>, vector<8x8x2x8x2xf32>
    %1 = vector.extract_strided_slice %0 {offsets = [0, 0, 0, 0, 0], sizes = [8, 8, 1, 8, 1], strides = [1, 1, 1, 1, 1]} : vector<8x8x2x8x2xf32> to vector<8x8x1x8x1xf32>
    %2 = vector.extract_strided_slice %0 {offsets = [0, 0, 0, 0, 1], sizes = [8, 8, 1, 8, 1], strides = [1, 1, 1, 1, 1]} : vector<8x8x2x8x2xf32> to vector<8x8x1x8x1xf32>
    %3 = vector.extract_strided_slice %0 {offsets = [0, 0, 1, 0, 0], sizes = [8, 8, 1, 8, 1], strides = [1, 1, 1, 1, 1]} : vector<8x8x2x8x2xf32> to vector<8x8x1x8x1xf32>
    %4 = vector.extract_strided_slice %0 {offsets = [0, 0, 1, 0, 1], sizes = [8, 8, 1, 8, 1], strides = [1, 1, 1, 1, 1]} : vector<8x8x2x8x2xf32> to vector<8x8x1x8x1xf32>
    %5 = arith.maximumf %1, %2 : vector<8x8x1x8x1xf32>
    %cst = arith.constant 0xFF800000 : f32
    %6 = vector.broadcast %cst : f32 to vector<8x8x1x1x1xf32>
    %7 = vector.extract_strided_slice %2 {offsets = [0, 0, 0, 0, 0], sizes = [8, 8, 1, 7, 1], strides = [1, 1, 1, 1, 1]} : vector<8x8x1x8x1xf32> to vector<8x8x1x7x1xf32>
    %8 = tpu.concatenate %6, %7 in 3 : vector<8x8x1x1x1xf32>, vector<8x8x1x7x1xf32> -> vector<8x8x1x8x1xf32>
    %9 = arith.maximumf %5, %8 : vector<8x8x1x8x1xf32>
    %10 = arith.maximumf %3, %4 : vector<8x8x1x8x1xf32>
    %cst_4 = arith.constant 0xFF800000 : f32
    %11 = vector.broadcast %cst_4 : f32 to vector<8x8x1x1x1xf32>
    %12 = vector.extract_strided_slice %4 {offsets = [0, 0, 0, 0, 0], sizes = [8, 8, 1, 7, 1], strides = [1, 1, 1, 1, 1]} : vector<8x8x1x8x1xf32> to vector<8x8x1x7x1xf32>
    %13 = tpu.concatenate %11, %12 in 3 : vector<8x8x1x1x1xf32>, vector<8x8x1x7x1xf32> -> vector<8x8x1x8x1xf32>
    %14 = arith.maximumf %10, %13 : vector<8x8x1x8x1xf32>
    %15 = arith.maximumf %9, %14 : vector<8x8x1x8x1xf32>
    %cst_5 = arith.constant 0xFF800000 : f32
    %16 = vector.broadcast %cst_5 : f32 to vector<8x1x1x8x1xf32>
    %17 = vector.extract_strided_slice %14 {offsets = [0, 0, 0, 0, 0], sizes = [8, 7, 1, 8, 1], strides = [1, 1, 1, 1, 1]} : vector<8x8x1x8x1xf32> to vector<8x7x1x8x1xf32>
    %18 = tpu.concatenate %16, %17 in 1 : vector<8x1x1x8x1xf32>, vector<8x7x1x8x1xf32> -> vector<8x8x1x8x1xf32>
    %19 = arith.maximumf %15, %18 : vector<8x8x1x8x1xf32>
    %c0_6 = arith.constant 0 : index
    %c0_7 = arith.constant 0 : index
    %c0_8 = arith.constant 0 : index
    %c0_9 = arith.constant 0 : index
    %c0_10 = arith.constant 0 : index
    %20 = vector.load %arg1[%c0_6, %c0_7, %c0_8, %c0_9, %c0_10] : memref<8x8x1x8x1xf32, #tpu.memory_space<vmem>>, vector<8x8x1x8x1xf32>
    tpu.vector_store %arg1[%c0_6, %c0_7, %c0_8, %c0_9, %c0_10], %19 {strides = array<i32>} : memref<8x8x1x8x1xf32, #tpu.memory_space<vmem>>, vector<8x8x1x8x1xf32>,
    return
  }
}

</mosaic_0001>

<bundles_post_ra>
// kernel: tpu_custom_call.1
= control target key start
LH: loop header
LB: loop body
LE: loop exit
PB: predicated region body
PF: predicated region fallthrough
CT: control target
= control target key end

     0   :  { %s1843_s10 = smov 127   ;;  %vm712_vm0 = vcmask 1040384   ;;  %vm1665_vm1 = vcmask 7168   ;;  %s4377_s0 = inlined_call_operand.vmem [shape: f32[8,8,2,8,2], index: 0, kind: input, shape index: {}]   ;;  %s4378_s1 = inlined_call_operand.vmem [shape: f32[8,8,1,8,1], index: 1, kind: output, shape index: {}]  }
   0x1   :  { %v1857_v0 = vld [vmem:[%s4377_s0 + $0x20] sm:$0xff]  ;;  %v1871_v2 = vld [vmem:[%s4377_s0 + $0x30] sm:$0xff] }
   0x2   :  { %v1862_v1 = vld [vmem:[%s4377_s0] sm:$0xff]  ;;  %204 = vrot.lane.b32.xlu1 %v1857_v0, %s1843_s10  ;;  %v1876_v3 = vld [vmem:[%s4377_s0 + $0x10] sm:$0xff] }
   0x3   :  { %200 = vrot.lane.b32.xlu0 %v1862_v1, %s1843_s10  ;;  %v1885_v4 = vld [vmem:[%s4377_s0 + $0x50] sm:$0xff]  ;;  %v1890_v5 = vld [vmem:[%s4377_s0 + $0x40] sm:$0xff] }
   0x4   :  { %v1899_v6 = vld [vmem:[%s4377_s0 + $0x70] sm:$0xff]  ;;  %v1904_v7 = vld [vmem:[%s4377_s0 + $0x60] sm:$0xff] }
   0x5   :  { %v1913_v8 = vld [vmem:[%s4377_s0 + $0x90] sm:$0xff]  ;;  %v1918_v9 = vld [vmem:[%s4377_s0 + $0x80] sm:$0xff] }
   0x6   :  { %206 = vrot.lane.b32.xlu1 %v1871_v2, %s1843_s10  ;;  %v1927_v10 = vld [vmem:[%s4377_s0 + $0xb0] sm:$0xff]  ;;  %v1932_v11 = vld [vmem:[%s4377_s0 + $0xa0] sm:$0xff] }
   0x7   :  { %202 = vrot.lane.b32.xlu0 %v1876_v3, %s1843_s10  ;;  %v1941_v12 = vld [vmem:[%s4377_s0 + $0xd0] sm:$0xff]  ;;  %v1946_v13 = vld [vmem:[%s4377_s0 + $0xc0] sm:$0xff] }
   0x8   :  { %v1955_v14 = vld [vmem:[%s4377_s0 + $0xf0] sm:$0xff]  ;;  %v1960_v15 = vld [vmem:[%s4377_s0 + $0xe0] sm:$0xff] }
   0x9   :  { %v1969_v16 = vld [vmem:[%s4377_s0 + $0x110] sm:$0xff]  ;;  %v1974_v17 = vld [vmem:[%s4377_s0 + $0x100] sm:$0xff] }
   0xa   :  { %210 = vrot.lane.b32.xlu1 %v1885_v4, %s1843_s10  ;;  %v1983_v18 = vld [vmem:[%s4377_s0 + $0x130] sm:$0xff]  ;;  %v1988_v19 = vld [vmem:[%s4377_s0 + $0x120] sm:$0xff] }
   0xb   :  { %208 = vrot.lane.b32.xlu0 %v1890_v5, %s1843_s10  ;;  %v1997_v20 = vld [vmem:[%s4377_s0 + $0x150] sm:$0xff]  ;;  %v2002_v21 = vld [vmem:[%s4377_s0 + $0x140] sm:$0xff] }
   0xc   :  { %v2011_v22 = vld [vmem:[%s4377_s0 + $0x170] sm:$0xff]  ;;  %v2016_v23 = vld [vmem:[%s4377_s0 + $0x160] sm:$0xff] }
   0xd   :  { %v2025_v24 = vld [vmem:[%s4377_s0 + $0x190] sm:$0xff]  ;;  %v2030_v25 = vld [vmem:[%s4377_s0 + $0x180] sm:$0xff] }
   0xe   :  { %214 = vrot.lane.b32.xlu1 %v1899_v6, %s1843_s10  ;;  %v2039_v26 = vld [vmem:[%s4377_s0 + $0x1b0] sm:$0xff]  ;;  %v2044_v27 = vld [vmem:[%s4377_s0 + $0x1a0] sm:$0xff] }
   0xf   :  { %212 = vrot.lane.b32.xlu0 %v1904_v7, %s1843_s10  ;;  %v2053_v28 = vld [vmem:[%s4377_s0 + $0x1d0] sm:$0xff]  ;;  %v2058_v29 = vld [vmem:[%s4377_s0 + $0x1c0] sm:$0xff] }
  0x10   :  { %v2067_v30 = vld [vmem:[%s4377_s0 + $0x1f0] sm:$0xff]  ;;  %v2072_v31 = vld [vmem:[%s4377_s0 + $0x1e0] sm:$0xff] }
  0x11   :  { %v2081_v32 = vld [vmem:[%s4377_s0 + $0x210] sm:$0xff]  ;;  %v2086_v33 = vld [vmem:[%s4377_s0 + $0x200] sm:$0xff] }
  0x12   :  { %218 = vrot.lane.b32.xlu1 %v1913_v8, %s1843_s10  ;;  %v2095_v34 = vld [vmem:[%s4377_s0 + $0x230] sm:$0xff]  ;;  %v2100_v35 = vld [vmem:[%s4377_s0 + $0x220] sm:$0xff] }
  0x13   :  { %216 = vrot.lane.b32.xlu0 %v1918_v9, %s1843_s10  ;;  %v2109_v36 = vld [vmem:[%s4377_s0 + $0x250] sm:$0xff]  ;;  %v2114_v37 = vld [vmem:[%s4377_s0 + $0x240] sm:$0xff] }
  0x14   :  { %v2123_v38 = vld [vmem:[%s4377_s0 + $0x270] sm:$0xff]  ;;  %v2128_v39 = vld [vmem:[%s4377_s0 + $0x260] sm:$0xff] }
  0x15   :  { %v2137_v40 = vld [vmem:[%s4377_s0 + $0x290] sm:$0xff]  ;;  %v2142_v41 = vld [vmem:[%s4377_s0 + $0x280] sm:$0xff] }
  0x16   :  { %222 = vrot.lane.b32.xlu1 %v1927_v10, %s1843_s10  ;;  %v2151_v42 = vld [vmem:[%s4377_s0 + $0x2b0] sm:$0xff]  ;;  %v2156_v43 = vld [vmem:[%s4377_s0 + $0x2a0] sm:$0xff] }
  0x17   :  { %220 = vrot.lane.b32.xlu0 %v1932_v11, %s1843_s10  ;;  %v2165_v44 = vld [vmem:[%s4377_s0 + $0x2d0] sm:$0xff]  ;;  %v2170_v45 = vld [vmem:[%s4377_s0 + $0x2c0] sm:$0xff] }
  0x18   :  { %v2179_v46 = vld [vmem:[%s4377_s0 + $0x2f0] sm:$0xff]  ;;  %v2184_v47 = vld [vmem:[%s4377_s0 + $0x2e0] sm:$0xff] }
  0x19   :  { %v2193_v48 = vld [vmem:[%s4377_s0 + $0x310] sm:$0xff]  ;;  %v2198_v49 = vld [vmem:[%s4377_s0 + $0x300] sm:$0xff] }
  0x1a   :  { %226 = vrot.lane.b32.xlu1 %v1941_v12, %s1843_s10  ;;  %v2207_v50 = vld [vmem:[%s4377_s0 + $0x330] sm:$0xff]  ;;  %v2212_v51 = vld [vmem:[%s4377_s0 + $0x320] sm:$0xff] }
  0x1b   :  { %224 = vrot.lane.b32.xlu0 %v1946_v13, %s1843_s10  ;;  %v2221_v52 = vld [vmem:[%s4377_s0 + $0x350] sm:$0xff]  ;;  %v2226_v53 = vld [vmem:[%s4377_s0 + $0x340] sm:$0xff] }
  0x1c   :  { %v2235_v54 = vld [vmem:[%s4377_s0 + $0x370] sm:$0xff]  ;;  %v2240_v55 = vld [vmem:[%s4377_s0 + $0x360] sm:$0xff] }
  0x1d   :  { %4405 = vst [vmem:[#allocation2_spill] sm:$0xff] %v2240_v55  ;;  %v2249_v56 = vld [vmem:[%s4377_s0 + $0x390] sm:$0xff]  ;;  %v2254_v57 = vld [vmem:[%s4377_s0 + $0x380] sm:$0xff] }
  0x1e   :  { %230 = vrot.lane.b32.xlu1 %v1955_v14, %s1843_s10  ;;  %4406 = vst [vmem:[#allocation3_spill] sm:$0xff] %v2249_v56  ;;  %4407 = vst [vmem:[#allocation4_spill] sm:$0xff] %v2254_v57  ;;  %v2263_v58 = vld [vmem:[%s4377_s0 + $0x3b0] sm:$0xff]  ;;  %v2268_v59 = vld [vmem:[%s4377_s0 + $0x3a0] sm:$0xff] }
  0x1f   :  { %228 = vrot.lane.b32.xlu0 %v1960_v15, %s1843_s10  ;;  %4408 = vst [vmem:[#allocation5_spill] sm:$0xff] %v2263_v58  ;;  %4409 = vst [vmem:[#allocation6_spill] sm:$0xff] %v2268_v59  ;;  %v2281_v62 = vld [vmem:[%s4377_s0 + $0x3d0] sm:$0xff]  ;;  %v2286_v63 = vld [vmem:[%s4377_s0 + $0x3c0] sm:$0xff] }
  0x20   :  { %4412 = vst [vmem:[#allocation9_spill] sm:$0xff] %v2281_v62  ;;  %4413 = vst [vmem:[#allocation10_spill] sm:$0xff] %v2286_v63 }
  0x22   :  { %234 = vrot.lane.b32.xlu1 %v1969_v16, %s1843_s10 }
  0x23   :  { %232 = vrot.lane.b32.xlu0 %v1974_v17, %s1843_s10 }
  0x26   :  { %238 = vrot.lane.b32.xlu1 %v1983_v18, %s1843_s10 }
  0x27   :  { %236 = vrot.lane.b32.xlu0 %v1988_v19, %s1843_s10 }
  0x2a   :  { %242 = vrot.lane.b32.xlu1 %v1997_v20, %s1843_s10 }
  0x2b   :  { %240 = vrot.lane.b32.xlu0 %v2002_v21, %s1843_s10 }
  0x2e   :  { %246 = vrot.lane.b32.xlu1 %v2011_v22, %s1843_s10 }
  0x2f   :  { %244 = vrot.lane.b32.xlu0 %v2016_v23, %s1843_s10 }
  0x32   :  { %250 = vrot.lane.b32.xlu1 %v2025_v24, %s1843_s10 }
  0x33   :  { %248 = vrot.lane.b32.xlu0 %v2030_v25, %s1843_s10 }
  0x36   :  { %254 = vrot.lane.b32.xlu1 %v2039_v26, %s1843_s10 }
  0x37   :  { %252 = vrot.lane.b32.xlu0 %v2044_v27, %s1843_s10 }
  0x3a   :  { %258 = vrot.lane.b32.xlu1 %v2053_v28, %s1843_s10 }
  0x3b   :  { %256 = vrot.lane.b32.xlu0 %v2058_v29, %s1843_s10 }
  0x3e   :  { %262 = vrot.lane.b32.xlu1 %v2067_v30, %s1843_s10 }
  0x3f   :  { %260 = vrot.lane.b32.xlu0 %v2072_v31, %s1843_s10 }
  0x42   :  { %266 = vrot.lane.b32.xlu1 %v2081_v32, %s1843_s10 }
  0x43   :  { %264 = vrot.lane.b32.xlu0 %v2086_v33, %s1843_s10 }
  0x46   :  { %270 = vrot.lane.b32.xlu1 %v2095_v34, %s1843_s10 }
  0x47   :  { %268 = vrot.lane.b32.xlu0 %v2100_v35, %s1843_s10 }
  0x4a   :  { %274 = vrot.lane.b32.xlu1 %v2109_v36, %s1843_s10 }
  0x4b   :  { %272 = vrot.lane.b32.xlu0 %v2114_v37, %s1843_s10 }
  0x4e   :  { %278 = vrot.lane.b32.xlu1 %v2123_v38, %s1843_s10 }
  0x4f   :  { %276 = vrot.lane.b32.xlu0 %v2128_v39, %s1843_s10 }
  0x52   :  { %282 = vrot.lane.b32.xlu1 %v2137_v40, %s1843_s10 }
  0x53   :  { %280 = vrot.lane.b32.xlu0 %v2142_v41, %s1843_s10 }
  0x56   :  { %286 = vrot.lane.b32.xlu1 %v2151_v42, %s1843_s10 }
  0x57   :  { %284 = vrot.lane.b32.xlu0 %v2156_v43, %s1843_s10 }
  0x5a   :  { %290 = vrot.lane.b32.xlu1 %v2165_v44, %s1843_s10 }
  0x5b   :  { %288 = vrot.lane.b32.xlu0 %v2170_v45, %s1843_s10 }
  0x5e   :  { %294 = vrot.lane.b32.xlu1 %v2179_v46, %s1843_s10 }
  0x5f   :  { %292 = vrot.lane.b32.xlu0 %v2184_v47, %s1843_s10 }
  0x62   :  { %298 = vrot.lane.b32.xlu1 %v2193_v48, %s1843_s10 }
  0x63   :  { %296 = vrot.lane.b32.xlu0 %v2198_v49, %s1843_s10 }
  0x66   :  { %302 = vrot.lane.b32.xlu1 %v2207_v50, %s1843_s10 }
  0x67   :  { %300 = vrot.lane.b32.xlu0 %v2212_v51, %s1843_s10 }
  0x6a   :  { %306 = vrot.lane.b32.xlu1 %v2221_v52, %s1843_s10 }
  0x6b   :  { %304 = vrot.lane.b32.xlu0 %v2226_v53, %s1843_s10 }
  0x6e   :  { %310 = vrot.lane.b32.xlu1 %v2235_v54, %s1843_s10 }
  0x6f   :  { %308 = vrot.lane.b32.xlu0 %v2240_v55, %s1843_s10 }
  0x72   :  { %314 = vrot.lane.b32.xlu1 %v2249_v56, %s1843_s10 }
  0x73   :  { %312 = vrot.lane.b32.xlu0 %v2254_v57, %s1843_s10 }
  0x74   :  { %v2270_v60 = vpop.permute.xlu1 %204 }
  0x75   :  { %4410 = vst [vmem:[#allocation7_spill] sm:$0xff] %v2270_v60  ;;  %v2272_v61 = vpop.permute.xlu0 %200 }
  0x76   :  { %4411 = vst [vmem:[#allocation8_spill] sm:$0xff] %v2272_v61  ;;  %318 = vrot.lane.b32.xlu1 %v2263_v58, %s1843_s10  ;;  %v2299_v61 = vld [vmem:[%s4377_s0 + $0x3f0] sm:$0xff] }
  0x77   :  { %316 = vrot.lane.b32.xlu0 %v2268_v59, %s1843_s10  ;;  %4416 = vst [vmem:[#allocation13_spill] sm:$0xff] %v2299_v61  ;;  %v2304_v59 = vld [vmem:[%s4377_s0 + $0x3e0] sm:$0xff] }
  0x78   :  { %v2288_v57 = vpop.permute.xlu1 %206 }
  0x79   :  { %4414 = vst [vmem:[#allocation11_spill] sm:$0xff] %v2288_v57  ;;  %v2290_v60 = vpop.permute.xlu0 %202 }
  0x7a   :  { %4415 = vst [vmem:[#allocation12_spill] sm:$0xff] %v2290_v60  ;;  %322 = vrot.lane.b32.xlu1 %v2281_v62, %s1843_s10  ;;  %v457_v60 = vrot.slane %v1876_v3, 7  ;;  %v460_v3 = vrot.slane %v1890_v5, 7  ;;  %v464_v5 = vrot.slane %v1918_v9, 7  ;;  %v468_v9 = vrot.slane %v1946_v13, 7 }
  0x7b   :  { %320 = vrot.lane.b32.xlu0 %v2286_v63, %s1843_s10  ;;  %v456_v63 = vrot.slane %v1862_v1, 7  ;;  %v461_v1 = vrot.slane %v1885_v4, 7  ;;  %v465_v4 = vrot.slane %v1913_v8, 7  ;;  %v469_v8 = vrot.slane %v1941_v12, 7 }
  0x7c   :  { %v2306_v58 = vpop.permute.xlu1 %210  ;;  %v473_v12 = vrot.slane %v1969_v16, 7  ;;  %v472_v13 = vrot.slane %v1974_v17, 7  ;;  %v477_v16 = vrot.slane %v1997_v20, 7  ;;  %v476_v17 = vrot.slane %v2002_v21, 7 }
  0x7d   :  { %4417 = vst [vmem:[#allocation14_spill] sm:$0xff] %v2306_v58  ;;  %v2308_v57 = vpop.permute.xlu0 %208  ;;  %v458_v58 = vrot.slane %v1857_v0, 7  ;;  %v463_v0 = vrot.slane %v1899_v6, 7  ;;  %v467_v6 = vrot.slane %v1927_v10, 7  ;;  %v471_v10 = vrot.slane %v1955_v14, 7 }
  0x7e   :  { %4418 = vst [vmem:[#allocation15_spill] sm:$0xff] %v2308_v57  ;;  %326 = vrot.lane.b32.xlu1 %v2299_v61, %s1843_s10  ;;  %v459_v57 = vrot.slane %v1871_v2, 7  ;;  %v462_v2 = vrot.slane %v1904_v7, 7  ;;  %v466_v7 = vrot.slane %v1932_v11, 7  ;;  %v470_v11 = vrot.slane %v1960_v15, 7 }
  0x7f   :  { %324 = vrot.lane.b32.xlu0 %v2304_v59, %s1843_s10  ;;  %v475_v14 = vrot.slane %v1983_v18, 7  ;;  %v474_v15 = vrot.slane %v1988_v19, 7  ;;  %v479_v18 = vrot.slane %v2011_v22, 7  ;;  %v478_v19 = vrot.slane %v2016_v23, 7 }
  0x80   :  { %v2316_v62 = vpop.permute.xlu1 %214  ;;  %v481_v20 = vrot.slane %v2025_v24, 7  ;;  %v480_v21 = vrot.slane %v2030_v25, 7  ;;  %v483_v22 = vrot.slane %v2039_v26, 7  ;;  %v482_v23 = vrot.slane %v2044_v27, 7 }
  0x81   :  { %4419 = vst [vmem:[#allocation16_spill] sm:$0xff] %v2316_v62  ;;  %v2318_v56 = vpop.permute.xlu0 %212  ;;  %v485_v24 = vrot.slane %v2053_v28, 7  ;;  %v484_v25 = vrot.slane %v2058_v29, 7  ;;  %v487_v26 = vrot.slane %v2067_v30, 7  ;;  %v486_v27 = vrot.slane %v2072_v31, 7 }
  0x82   :  { %4420 = vst [vmem:[#allocation17_spill] sm:$0xff] %v2318_v56  ;;  %522 = vrot.lane.b32.xlu1 %v457_v60, %s1843_s10  ;;  %v489_v28 = vrot.slane %v2081_v32, 7  ;;  %v488_v29 = vrot.slane %v2086_v33, 7  ;;  %v491_v30 = vrot.slane %v2095_v34, 7  ;;  %v490_v31 = vrot.slane %v2100_v35, 7 }
  0x83   :  { %520 = vrot.lane.b32.xlu0 %v456_v63, %s1843_s10  ;;  %v493_v32 = vrot.slane %v2109_v36, 7  ;;  %v492_v33 = vrot.slane %v2114_v37, 7  ;;  %v495_v35 = vrot.slane %v2123_v38, 7  ;;  %v497_v37 = vrot.slane %v2137_v40, 7 }
  0x84   :  { %v2324_v61 = vpop.permute.xlu1 %218 }
  0x85   :  { %4421 = vst [vmem:[#allocation18_spill] sm:$0xff] %v2324_v61  ;;  %v2326_v55 = vpop.permute.xlu0 %216 }
  0x86   :  { %4422 = vst [vmem:[#allocation19_spill] sm:$0xff] %v2326_v55  ;;  %526 = vrot.lane.b32.xlu1 %v459_v57, %s1843_s10  ;;  %v3028_v55 = vld [vmem:[%s4377_s0 + $0x328] sm:$0xff] }
  0x87   :  { %524 = vrot.lane.b32.xlu0 %v458_v58, %s1843_s10 }
  0x88   :  { %v2332_v56 = vpop.permute.xlu1 %222 }
  0x89   :  { %4423 = vst [vmem:[#allocation20_spill] sm:$0xff] %v2332_v56  ;;  %v2334_v60 = vpop.permute.xlu0 %220 }
  0x8a   :  { %4424 = vst [vmem:[#allocation21_spill] sm:$0xff] %v2334_v60  ;;  %530 = vrot.lane.b32.xlu1 %v461_v1, %s1843_s10  ;;  %v2974_v60 = vld [vmem:[%s4377_s0 + $0x2c8] sm:$0xff] }
  0x8b   :  { %528 = vrot.lane.b32.xlu0 %v460_v3, %s1843_s10 }
  0x8c   :  { %v2340_v63 = vpop.permute.xlu1 %226 }
  0x8d   :  { %4425 = vst [vmem:[#allocation22_spill] sm:$0xff] %v2340_v63  ;;  %v2342_v57 = vpop.permute.xlu0 %224 }
  0x8e   :  { %4426 = vst [vmem:[#allocation23_spill] sm:$0xff] %v2342_v57  ;;  %534 = vrot.lane.b32.xlu1 %v463_v0, %s1843_s10  ;;  %v2938_v57 = vld [vmem:[%s4377_s0 + $0x288] sm:$0xff] }
  0x8f   :  { %532 = vrot.lane.b32.xlu0 %v462_v2, %s1843_s10  ;;  %4534 = vst [vmem:[#allocation115_spill] sm:$0xff] %v2938_v57 }
  0x90   :  { %v2348_v58 = vpop.permute.xlu1 %230 }
  0x91   :  { %4427 = vst [vmem:[#allocation24_spill] sm:$0xff] %v2348_v58  ;;  %v2350_v1 = vpop.permute.xlu0 %228 }
  0x92   :  { %4428 = vst [vmem:[#allocation25_spill] sm:$0xff] %v2350_v1  ;;  %538 = vrot.lane.b32.xlu1 %v465_v4, %s1843_s10  ;;  %v2902_v1 = vld [vmem:[%s4377_s0 + $0x248] sm:$0xff] }
  0x93   :  { %536 = vrot.lane.b32.xlu0 %v464_v5, %s1843_s10 }
  0x94   :  { %v2356_v3 = vpop.permute.xlu1 %234 }
  0x95   :  { %4429 = vst [vmem:[#allocation26_spill] sm:$0xff] %v2356_v3  ;;  %v2358_v0 = vpop.permute.xlu0 %232 }
  0x96   :  { %4430 = vst [vmem:[#allocation27_spill] sm:$0xff] %v2358_v0  ;;  %542 = vrot.lane.b32.xlu1 %v467_v6, %s1843_s10  ;;  %v2866_v0 = vld [vmem:[%s4377_s0 + $0x208] sm:$0xff] }
  0x97   :  { %540 = vrot.lane.b32.xlu0 %v466_v7, %s1843_s10  ;;  %4525 = vst [vmem:[#allocation106_spill] sm:$0xff] %v2866_v0 }
  0x98   :  { %v2364_v2 = vpop.permute.xlu1 %238 }
  0x99   :  { %4431 = vst [vmem:[#allocation28_spill] sm:$0xff] %v2364_v2  ;;  %v2366_v4 = vpop.permute.xlu0 %236 }
  0x9a   :  { %4432 = vst [vmem:[#allocation29_spill] sm:$0xff] %v2366_v4  ;;  %546 = vrot.lane.b32.xlu1 %v469_v8, %s1843_s10  ;;  %v2848_v4 = vld [vmem:[%s4377_s0 + $0x1e8] sm:$0xff] }
  0x9b   :  { %544 = vrot.lane.b32.xlu0 %v468_v9, %s1843_s10 }
  0x9c   :  { %v2372_v5 = vpop.permute.xlu1 %242 }
  0x9d   :  { %4433 = vst [vmem:[#allocation30_spill] sm:$0xff] %v2372_v5  ;;  %v2374_v6 = vpop.permute.xlu0 %240  ;;  %v2830_v5 = vld [vmem:[%s4377_s0 + $0x1c8] sm:$0xff] }
  0x9e   :  { %4434 = vst [vmem:[#allocation31_spill] sm:$0xff] %v2374_v6  ;;  %550 = vrot.lane.b32.xlu1 %v471_v10, %s1843_s10  ;;  %v2794_v6 = vld [vmem:[%s4377_s0 + $0x188] sm:$0xff] }
  0x9f   :  { %548 = vrot.lane.b32.xlu0 %v470_v11, %s1843_s10 }
  0xa0   :  { %v2380_v7 = vpop.permute.xlu1 %246 }
  0xa1   :  { %4435 = vst [vmem:[#allocation32_spill] sm:$0xff] %v2380_v7  ;;  %v2382_v8 = vpop.permute.xlu0 %244 }
  0xa2   :  { %4436 = vst [vmem:[#allocation33_spill] sm:$0xff] %v2382_v8  ;;  %554 = vrot.lane.b32.xlu1 %v473_v12, %s1843_s10  ;;  %v2776_v8 = vld [vmem:[%s4377_s0 + $0x168] sm:$0xff] }
  0xa3   :  { %552 = vrot.lane.b32.xlu0 %v472_v13, %s1843_s10 }
  0xa4   :  { %v2388_v9 = vpop.permute.xlu1 %250 }
  0xa5   :  { %4437 = vst [vmem:[#allocation34_spill] sm:$0xff] %v2388_v9  ;;  %v2390_v10 = vpop.permute.xlu0 %248  ;;  %v2753_v9 = vld [vmem:[%s4377_s0 + $0x158] sm:$0xff] }
  0xa6   :  { %4438 = vst [vmem:[#allocation35_spill] sm:$0xff] %v2390_v10  ;;  %558 = vrot.lane.b32.xlu1 %v475_v14, %s1843_s10 }
  0xa7   :  { %556 = vrot.lane.b32.xlu0 %v474_v15, %s1843_s10 }
  0xa8   :  { %v2396_v11 = vpop.permute.xlu1 %254 }
  0xa9   :  { %4439 = vst [vmem:[#allocation36_spill] sm:$0xff] %v2396_v11  ;;  %v2398_v12 = vpop.permute.xlu0 %252 }
  0xaa   :  { %4440 = vst [vmem:[#allocation37_spill] sm:$0xff] %v2398_v12  ;;  %562 = vrot.lane.b32.xlu1 %v477_v16, %s1843_s10  ;;  %v2740_v12 = vld [vmem:[%s4377_s0 + $0x128] sm:$0xff] }
  0xab   :  { %560 = vrot.lane.b32.xlu0 %v476_v17, %s1843_s10 }
  0xac   :  { %v2404_v13 = vpop.permute.xlu1 %258 }
  0xad   :  { %4441 = vst [vmem:[#allocation38_spill] sm:$0xff] %v2404_v13  ;;  %v2406_v14 = vpop.permute.xlu0 %256  ;;  %v2735_v13 = vld [vmem:[%s4377_s0 + $0x138] sm:$0xff] }
  0xae   :  { %4442 = vst [vmem:[#allocation39_spill] sm:$0xff] %v2406_v14  ;;  %566 = vrot.lane.b32.xlu1 %v479_v18, %s1843_s10 }
  0xaf   :  { %564 = vrot.lane.b32.xlu0 %v478_v19, %s1843_s10 }
  0xb0   :  { %v2412_v15 = vpop.permute.xlu1 %262 }
  0xb1   :  { %4443 = vst [vmem:[#allocation40_spill] sm:$0xff] %v2412_v15  ;;  %v2414_v16 = vpop.permute.xlu0 %260 }
  0xb2   :  { %4444 = vst [vmem:[#allocation41_spill] sm:$0xff] %v2414_v16  ;;  %570 = vrot.lane.b32.xlu1 %v481_v20, %s1843_s10  ;;  %v2722_v16 = vld [vmem:[%s4377_s0 + $0x108] sm:$0xff] }
  0xb3   :  { %568 = vrot.lane.b32.xlu0 %v480_v21, %s1843_s10 }
  0xb4   :  { %v2420_v17 = vpop.permute.xlu1 %266 }
  0xb5   :  { %4445 = vst [vmem:[#allocation42_spill] sm:$0xff] %v2420_v17  ;;  %v2422_v18 = vpop.permute.xlu0 %264  ;;  %v2668_v17 = vld [vmem:[%s4377_s0 + $0xa8] sm:$0xff] }
  0xb6   :  { %4446 = vst [vmem:[#allocation43_spill] sm:$0xff] %v2422_v18  ;;  %574 = vrot.lane.b32.xlu1 %v483_v22, %s1843_s10  ;;  %v2663_v18 = vld [vmem:[%s4377_s0 + $0xb8] sm:$0xff] }
  0xb7   :  { %572 = vrot.lane.b32.xlu0 %v482_v23, %s1843_s10 }
  0xb8   :  { %v2428_v19 = vpop.permute.xlu1 %270 }
  0xb9   :  { %4447 = vst [vmem:[#allocation44_spill] sm:$0xff] %v2428_v19  ;;  %v2430_v20 = vpop.permute.xlu0 %268  ;;  %v2717_v19 = vld [vmem:[%s4377_s0 + $0x118] sm:$0xff] }
  0xba   :  { %4448 = vst [vmem:[#allocation45_spill] sm:$0xff] %v2430_v20  ;;  %578 = vrot.lane.b32.xlu1 %v485_v24, %s1843_s10 }
  0xbb   :  { %576 = vrot.lane.b32.xlu0 %v484_v25, %s1843_s10 }
  0xbc   :  { %v2436_v21 = vpop.permute.xlu1 %274 }
  0xbd   :  { %4449 = vst [vmem:[#allocation46_spill] sm:$0xff] %v2436_v21  ;;  %v2438_v22 = vpop.permute.xlu0 %272  ;;  %v2704_v21 = vld [vmem:[%s4377_s0 + $0xe8] sm:$0xff] }
  0xbe   :  { %4450 = vst [vmem:[#allocation47_spill] sm:$0xff] %v2438_v22  ;;  %582 = vrot.lane.b32.xlu1 %v487_v26, %s1843_s10 }
  0xbf   :  { %580 = vrot.lane.b32.xlu0 %v486_v27, %s1843_s10 }
  0xc0   :  { %v2444_v23 = vpop.permute.xlu1 %278 }
  0xc1   :  { %4451 = vst [vmem:[#allocation48_spill] sm:$0xff] %v2444_v23  ;;  %v2446_v24 = vpop.permute.xlu0 %276 }
  0xc2   :  { %4452 = vst [vmem:[#allocation49_spill] sm:$0xff] %v2446_v24  ;;  %586 = vrot.lane.b32.xlu1 %v489_v28, %s1843_s10  ;;  %v494_v28 = vrot.slane %v2128_v39, 7  ;;  %v499_v39 = vrot.slane %v2151_v42, 7  ;;  %v2699_v24 = vld [vmem:[%s4377_s0 + $0xf8] sm:$0xff] }
  0xc3   :  { %584 = vrot.lane.b32.xlu0 %v488_v29, %s1843_s10 }
  0xc4   :  { %v2452_v25 = vpop.permute.xlu1 %282 }
  0xc5   :  { %4453 = vst [vmem:[#allocation50_spill] sm:$0xff] %v2452_v25  ;;  %v2454_v26 = vpop.permute.xlu0 %280 }
  0xc6   :  { %4454 = vst [vmem:[#allocation51_spill] sm:$0xff] %v2454_v26  ;;  %590 = vrot.lane.b32.xlu1 %v491_v30, %s1843_s10  ;;  %v496_v30 = vrot.slane %v2142_v41, 7  ;;  %v501_v41 = vrot.slane %v2165_v44, 7  ;;  %v2650_v26 = vld [vmem:[%s4377_s0 + $0x88] sm:$0xff] }
  0xc7   :  { %588 = vrot.lane.b32.xlu0 %v490_v31, %s1843_s10 }
  0xc8   :  { %v2460_v27 = vpop.permute.xlu1 %286 }
  0xc9   :  { %4455 = vst [vmem:[#allocation52_spill] sm:$0xff] %v2460_v27  ;;  %v2462_v34 = vpop.permute.xlu0 %284 }
  0xca   :  { %4456 = vst [vmem:[#allocation53_spill] sm:$0xff] %v2462_v34  ;;  %594 = vrot.lane.b32.xlu1 %v493_v32, %s1843_s10  ;;  %v498_v32 = vrot.slane %v2156_v43, 7  ;;  %v503_v43 = vrot.slane %v2179_v46, 7  ;;  %v2686_v34 = vld [vmem:[%s4377_s0 + $0xc8] sm:$0xff] }
  0xcb   :  { %592 = vrot.lane.b32.xlu0 %v492_v33, %s1843_s10 }
  0xcc   :  { %v2468_v29 = vpop.permute.xlu1 %290 }
  0xcd   :  { %4457 = vst [vmem:[#allocation54_spill] sm:$0xff] %v2468_v29  ;;  %v2470_v36 = vpop.permute.xlu0 %288  ;;  %v2681_v29 = vld [vmem:[%s4377_s0 + $0xd8] sm:$0xff] }
  0xce   :  { %4458 = vst [vmem:[#allocation55_spill] sm:$0xff] %v2470_v36  ;;  %598 = vrot.lane.b32.xlu1 %v495_v35, %s1843_s10  ;;  %v500_v35 = vrot.slane %v2170_v45, 7  ;;  %v505_v45 = vrot.slane %v2193_v48, 7 }
  0xcf   :  { %596 = vrot.lane.b32.xlu0 %v494_v28, %s1843_s10 }
  0xd0   :  { %v2476_v31 = vpop.permute.xlu1 %294 }
  0xd1   :  { %4459 = vst [vmem:[#allocation56_spill] sm:$0xff] %v2476_v31  ;;  %v2478_v38 = vpop.permute.xlu0 %292 }
  0xd2   :  { %4460 = vst [vmem:[#allocation57_spill] sm:$0xff] %v2478_v38  ;;  %602 = vrot.lane.b32.xlu1 %v497_v37, %s1843_s10  ;;  %v502_v37 = vrot.slane %v2184_v47, 7  ;;  %v507_v47 = vrot.slane %v2207_v50, 7 }
  0xd3   :  { %600 = vrot.lane.b32.xlu0 %v496_v30, %s1843_s10 }
  0xd4   :  { %v2484_v33 = vpop.permute.xlu1 %298 }
  0xd5   :  { %4461 = vst [vmem:[#allocation58_spill] sm:$0xff] %v2484_v33  ;;  %v2486_v40 = vpop.permute.xlu0 %296  ;;  %v2645_v33 = vld [vmem:[%s4377_s0 + $0x98] sm:$0xff] }
  0xd6   :  { %4462 = vst [vmem:[#allocation59_spill] sm:$0xff] %v2486_v40  ;;  %606 = vrot.lane.b32.xlu1 %v499_v39, %s1843_s10  ;;  %v504_v39 = vrot.slane %v2198_v49, 7  ;;  %v509_v49 = vrot.slane %v2221_v52, 7 }
  0xd7   :  { %604 = vrot.lane.b32.xlu0 %v498_v32, %s1843_s10 }
  0xd8   :  { %v2492_v28 = vpop.permute.xlu1 %302 }
  0xd9   :  { %4463 = vst [vmem:[#allocation60_spill] sm:$0xff] %v2492_v28  ;;  %v2494_v42 = vpop.permute.xlu0 %300 }
  0xda   :  { %4464 = vst [vmem:[#allocation61_spill] sm:$0xff] %v2494_v42  ;;  %610 = vrot.lane.b32.xlu1 %v501_v41, %s1843_s10  ;;  %v506_v41 = vrot.slane %v2212_v51, 7  ;;  %v511_v51 = vrot.slane %v2235_v54, 7 }
  0xdb   :  { %608 = vrot.lane.b32.xlu0 %v500_v35, %s1843_s10 }
  0xdc   :  { %v2500_v30 = vpop.permute.xlu1 %306 }
  0xdd   :  { %4465 = vst [vmem:[#allocation62_spill] sm:$0xff] %v2500_v30  ;;  %v2502_v44 = vpop.permute.xlu0 %304  ;;  %v2632_v30 = vld [vmem:[%s4377_s0 + $0x68] sm:$0xff] }
  0xde   :  { %4466 = vst [vmem:[#allocation63_spill] sm:$0xff] %v2502_v44  ;;  %614 = vrot.lane.b32.xlu1 %v503_v43, %s1843_s10  ;;  %v508_v43 = vrot.slane %v2226_v53, 7  ;;  %v4476_v53 = vld [vmem:[#allocation3_spill] sm:$0xff]  ;;  %v2627_v44 = vld [vmem:[%s4377_s0 + $0x78] sm:$0xff] }
  0xdf   :  { %612 = vrot.lane.b32.xlu0 %v502_v37, %s1843_s10 }
  0xe0   :  { %v2508_v32 = vpop.permute.xlu1 %310 }
  0xe1   :  { %4467 = vst [vmem:[#allocation64_spill] sm:$0xff] %v2508_v32  ;;  %v2510_v46 = vpop.permute.xlu0 %308 }
  0xe2   :  { %4468 = vst [vmem:[#allocation65_spill] sm:$0xff] %v2510_v46  ;;  %618 = vrot.lane.b32.xlu1 %v505_v45, %s1843_s10  ;;  %v4473_v45 = vld [vmem:[#allocation2_spill] sm:$0xff] }
  0xe3   :  { %616 = vrot.lane.b32.xlu0 %v504_v39, %s1843_s10  ;;  %v510_v39 = vrot.slane %v4473_v45, 7  ;;  %v4480_v45 = vld [vmem:[#allocation5_spill] sm:$0xff] }
  0xe4   :  { %v2516_v35 = vpop.permute.xlu1 %314 }
  0xe5   :  { %4469 = vst [vmem:[#allocation66_spill] sm:$0xff] %v2516_v35  ;;  %v2518_v48 = vpop.permute.xlu0 %312  ;;  %v2614_v35 = vld [vmem:[%s4377_s0 + $0x48] sm:$0xff] }
  0xe6   :  { %4470 = vst [vmem:[#allocation67_spill] sm:$0xff] %v2518_v48  ;;  %622 = vrot.lane.b32.xlu1 %v507_v47, %s1843_s10  ;;  %v513_v47 = vrot.slane %v4476_v53, 7  ;;  %v4477_v48 = vld [vmem:[#allocation4_spill] sm:$0xff] }
  0xe7   :  { %620 = vrot.lane.b32.xlu0 %v506_v41, %s1843_s10  ;;  %v512_v41 = vrot.slane %v4477_v48, 7  ;;  %v4484_v48 = vld [vmem:[#allocation9_spill] sm:$0xff] }
  0xe8   :  { %v2524_v37 = vpop.permute.xlu1 %318 }
  0xe9   :  { %4471 = vst [vmem:[#allocation68_spill] sm:$0xff] %v2524_v37  ;;  %v2526_v50 = vpop.permute.xlu0 %316  ;;  %v4481_v37 = vld [vmem:[#allocation6_spill] sm:$0xff] }
  0xea   :  { %4472 = vst [vmem:[#allocation69_spill] sm:$0xff] %v2526_v50  ;;  %626 = vrot.lane.b32.xlu1 %v509_v49, %s1843_s10  ;;  %v515_v49 = vrot.slane %v4480_v45, 7 }
  0xeb   :  { %624 = vrot.lane.b32.xlu0 %v508_v43, %s1843_s10  ;;  %v514_v43 = vrot.slane %v4481_v37, 7  ;;  %v4488_v37 = vld [vmem:[#allocation13_spill] sm:$0xff] }
  0xec   :  { %v2532_v40 = vpop.permute.xlu1 %322 }
  0xed   :  { %4474 = vst [vmem:[#allocation2_spill] sm:$0xff] %v2532_v40  ;;  %v2534_v52 = vpop.permute.xlu0 %320  ;;  %v4485_v40 = vld [vmem:[#allocation10_spill] sm:$0xff] }
  0xee   :  { %4475 = vst [vmem:[#allocation70_spill] sm:$0xff] %v2534_v52  ;;  %630 = vrot.lane.b32.xlu1 %v511_v51, %s1843_s10  ;;  %v517_v51 = vrot.slane %v4484_v48, 7 }
  0xef   :  { %628 = vrot.lane.b32.xlu0 %v510_v39, %s1843_s10  ;;  %v516_v39 = vrot.slane %v4485_v40, 7  ;;  %v2573_v40 = vld [vmem:[%s4377_s0 + $0x18] sm:$0xff] }
  0xf0   :  { %v2540_v50 = vpop.permute.xlu1 %326  ;;  %4491 = vst [vmem:[#allocation72_spill] sm:$0xff] %v2573_v40 }
  0xf1   :  { %4478 = vst [vmem:[#allocation3_spill] sm:$0xff] %v2540_v50  ;;  %v2542_v54 = vpop.permute.xlu0 %324 }
  0xf2   :  { %4479 = vst [vmem:[#allocation4_spill] sm:$0xff] %v2542_v54  ;;  %634 = vrot.lane.b32.xlu1 %v513_v47, %s1843_s10  ;;  %v519_v47 = vrot.slane %v4488_v37, 7 }
  0xf3   :  { %632 = vrot.lane.b32.xlu0 %v512_v41, %s1843_s10  ;;  %v518_v41 = vrot.slane %v2304_v59, 7  ;;  %v2578_v59 = vld [vmem:[%s4377_s0 + $0x8] sm:$0xff] }
  0xf4   :  { %v2548_v52 = vpop.permute.xlu1 %522  ;;  %4492 = vst [vmem:[#allocation73_spill] sm:$0xff] %v2578_v59 }
  0xf5   :  { %4482 = vst [vmem:[#allocation5_spill] sm:$0xff] %v2548_v52  ;;  %v2550_v53 = vpop.permute.xlu0 %520  ;;  %v1161_v52 = vrot.slane %v2578_v59, 7 }
  0xf6   :  { %4483 = vst [vmem:[#allocation6_spill] sm:$0xff] %v2550_v53  ;;  %638 = vrot.lane.b32.xlu1 %v515_v49, %s1843_s10 }
  0xf7   :  { %636 = vrot.lane.b32.xlu0 %v514_v43, %s1843_s10 }
  0xf8   :  { %v2556_v54 = vpop.permute.xlu1 %526 }
  0xf9   :  { %4486 = vst [vmem:[#allocation9_spill] sm:$0xff] %v2556_v54  ;;  %v2558_v45 = vpop.permute.xlu0 %524 }
  0xfa   :  { %4487 = vst [vmem:[#allocation10_spill] sm:$0xff] %v2558_v45  ;;  %642 = vrot.lane.b32.xlu1 %v517_v51, %s1843_s10  ;;  %v2591_v51 = vld [vmem:[%s4377_s0 + $0x38] sm:$0xff]  ;;  %v3100_v45 = vld [vmem:[%s4377_s0 + $0x3a8] sm:$0xff] }
  0xfb   :  { %640 = vrot.lane.b32.xlu0 %v516_v39, %s1843_s10  ;;  %v2596_v39 = vld [vmem:[%s4377_s0 + $0x28] sm:$0xff]  ;;  %4555 = vst [vmem:[#allocation136_spill] sm:$0xff] %v3100_v45 }
  0xfc   :  { %v2564_v50 = vpop.permute.xlu1 %530 }
  0xfd   :  { %4489 = vst [vmem:[#allocation13_spill] sm:$0xff] %v2564_v50  ;;  %v2566_v48 = vpop.permute.xlu0 %528  ;;  %v3082_v50 = vld [vmem:[%s4377_s0 + $0x388] sm:$0xff] }
  0xfe   :  { %4490 = vst [vmem:[#allocation71_spill] sm:$0xff] %v2566_v48  ;;  %646 = vrot.lane.b32.xlu1 %v519_v47, %s1843_s10  ;;  %4552 = vst [vmem:[#allocation133_spill] sm:$0xff] %v3082_v50 }
  0xff   :  { %644 = vrot.lane.b32.xlu0 %v518_v41, %s1843_s10  ;;  %v2609_v41 = vld [vmem:[%s4377_s0 + $0x58] sm:$0xff] }
 0x100   :  { %v2580_v49 = vpop.permute.xlu1 %534 }
 0x101   :  { %4493 = vst [vmem:[#allocation74_spill] sm:$0xff] %v2580_v49  ;;  %v2582_v43 = vpop.permute.xlu0 %532 }
 0x102   :  { %4494 = vst [vmem:[#allocation75_spill] sm:$0xff] %v2582_v43  ;;  %907 = vrot.lane.b32.xlu1 %v2573_v40, %s1843_s10  ;;  %v3046_v43 = vld [vmem:[%s4377_s0 + $0x348] sm:$0xff] }
 0x103   :  { %905 = vrot.lane.b32.xlu0 %v2578_v59, %s1843_s10 }
 0x104   :  { %v2598_v37 = vpop.permute.xlu1 %538 }
 0x105   :  { %4495 = vst [vmem:[#allocation76_spill] sm:$0xff] %v2598_v37  ;;  %v2600_v47 = vpop.permute.xlu0 %536 }
 0x106   :  { %4496 = vst [vmem:[#allocation77_spill] sm:$0xff] %v2600_v47  ;;  %911 = vrot.lane.b32.xlu1 %v2591_v51, %s1843_s10  ;;  %v3010_v47 = vld [vmem:[%s4377_s0 + $0x308] sm:$0xff] }
 0x107   :  { %909 = vrot.lane.b32.xlu0 %v2596_v39, %s1843_s10  ;;  %4543 = vst [vmem:[#allocation124_spill] sm:$0xff] %v3010_v47 }
 0x108   :  { %v2616_v46 = vpop.permute.xlu1 %542 }
 0x109   :  { %4497 = vst [vmem:[#allocation78_spill] sm:$0xff] %v2616_v46  ;;  %v2618_v32 = vpop.permute.xlu0 %540 }
 0x10a   :  { %4498 = vst [vmem:[#allocation79_spill] sm:$0xff] %v2618_v32  ;;  %915 = vrot.lane.b32.xlu1 %v2609_v41, %s1843_s10  ;;  %v2992_v32 = vld [vmem:[%s4377_s0 + $0x2e8] sm:$0xff] }
 0x10b   :  { %913 = vrot.lane.b32.xlu0 %v2614_v35, %s1843_s10 }
 0x10c   :  { %v2634_v28 = vpop.permute.xlu1 %546 }
 0x10d   :  { %4499 = vst [vmem:[#allocation80_spill] sm:$0xff] %v2634_v28  ;;  %v2636_v42 = vpop.permute.xlu0 %544  ;;  %v2956_v28 = vld [vmem:[%s4377_s0 + $0x2a8] sm:$0xff] }
 0x10e   :  { %4500 = vst [vmem:[#allocation81_spill] sm:$0xff] %v2636_v42  ;;  %919 = vrot.lane.b32.xlu1 %v2627_v44, %s1843_s10 }
 0x10f   :  { %917 = vrot.lane.b32.xlu0 %v2632_v30, %s1843_s10 }
 0x110   :  { %v2652_v25 = vpop.permute.xlu1 %550 }
 0x111   :  { %4501 = vst [vmem:[#allocation82_spill] sm:$0xff] %v2652_v25  ;;  %v2654_v38 = vpop.permute.xlu0 %548  ;;  %v2920_v25 = vld [vmem:[%s4377_s0 + $0x268] sm:$0xff] }
 0x112   :  { %4502 = vst [vmem:[#allocation83_spill] sm:$0xff] %v2654_v38  ;;  %923 = vrot.lane.b32.xlu1 %v2645_v33, %s1843_s10 }
 0x113   :  { %921 = vrot.lane.b32.xlu0 %v2650_v26, %s1843_s10 }
 0x114   :  { %v2670_v31 = vpop.permute.xlu1 %554 }
 0x115   :  { %4503 = vst [vmem:[#allocation84_spill] sm:$0xff] %v2670_v31  ;;  %v2672_v36 = vpop.permute.xlu0 %552  ;;  %v2884_v31 = vld [vmem:[%s4377_s0 + $0x228] sm:$0xff] }
 0x116   :  { %4504 = vst [vmem:[#allocation85_spill] sm:$0xff] %v2672_v36  ;;  %927 = vrot.lane.b32.xlu1 %v2663_v18, %s1843_s10 }
 0x117   :  { %925 = vrot.lane.b32.xlu0 %v2668_v17, %s1843_s10 }
 0x118   :  { %v2688_v27 = vpop.permute.xlu1 %558 }
 0x119   :  { %4505 = vst [vmem:[#allocation86_spill] sm:$0xff] %v2688_v27  ;;  %v2690_v23 = vpop.permute.xlu0 %556 }
 0x11a   :  { %4506 = vst [vmem:[#allocation87_spill] sm:$0xff] %v2690_v23  ;;  %931 = vrot.lane.b32.xlu1 %v2681_v29, %s1843_s10 }
 0x11b   :  { %929 = vrot.lane.b32.xlu0 %v2686_v34, %s1843_s10 }
 0x11c   :  { %v2706_v22 = vpop.permute.xlu1 %562 }
 0x11d   :  { %4507 = vst [vmem:[#allocation88_spill] sm:$0xff] %v2706_v22  ;;  %v2708_v20 = vpop.permute.xlu0 %560  ;;  %v2812_v22 = vld [vmem:[%s4377_s0 + $0x1a8] sm:$0xff] }
 0x11e   :  { %4508 = vst [vmem:[#allocation89_spill] sm:$0xff] %v2708_v20  ;;  %935 = vrot.lane.b32.xlu1 %v2699_v24, %s1843_s10 }
 0x11f   :  { %933 = vrot.lane.b32.xlu0 %v2704_v21, %s1843_s10 }
 0x120   :  { %v2724_v15 = vpop.permute.xlu1 %566 }
 0x121   :  { %4509 = vst [vmem:[#allocation90_spill] sm:$0xff] %v2724_v15  ;;  %v2726_v14 = vpop.permute.xlu0 %564 }
 0x122   :  { %4510 = vst [vmem:[#allocation91_spill] sm:$0xff] %v2726_v14  ;;  %939 = vrot.lane.b32.xlu1 %v2717_v19, %s1843_s10  ;;  %v2758_v14 = vld [vmem:[%s4377_s0 + $0x148] sm:$0xff] }
 0x123   :  { %937 = vrot.lane.b32.xlu0 %v2722_v16, %s1843_s10 }
 0x124   :  { %v2742_v11 = vpop.permute.xlu1 %570 }
 0x125   :  { %4511 = vst [vmem:[#allocation92_spill] sm:$0xff] %v2742_v11  ;;  %v2744_v10 = vpop.permute.xlu0 %568 }
 0x126   :  { %4512 = vst [vmem:[#allocation93_spill] sm:$0xff] %v2744_v10  ;;  %943 = vrot.lane.b32.xlu1 %v2735_v13, %s1843_s10  ;;  %v2771_v10 = vld [vmem:[%s4377_s0 + $0x178] sm:$0xff] }
 0x127   :  { %941 = vrot.lane.b32.xlu0 %v2740_v12, %s1843_s10 }
 0x128   :  { %v2760_v15 = vpop.permute.xlu1 %574 }
 0x129   :  { %4513 = vst [vmem:[#allocation94_spill] sm:$0xff] %v2760_v15  ;;  %v2762_v11 = vpop.permute.xlu0 %572 }
 0x12a   :  { %4514 = vst [vmem:[#allocation95_spill] sm:$0xff] %v2762_v11  ;;  %947 = vrot.lane.b32.xlu1 %v2753_v9, %s1843_s10  ;;  %v2789_v11 = vld [vmem:[%s4377_s0 + $0x198] sm:$0xff] }
 0x12b   :  { %945 = vrot.lane.b32.xlu0 %v2758_v14, %s1843_s10 }
 0x12c   :  { %v2778_v7 = vpop.permute.xlu1 %578 }
 0x12d   :  { %4515 = vst [vmem:[#allocation96_spill] sm:$0xff] %v2778_v7  ;;  %v2780_v15 = vpop.permute.xlu0 %576 }
 0x12e   :  { %4516 = vst [vmem:[#allocation97_spill] sm:$0xff] %v2780_v15  ;;  %951 = vrot.lane.b32.xlu1 %v2771_v10, %s1843_s10  ;;  %v2807_v15 = vld [vmem:[%s4377_s0 + $0x1b8] sm:$0xff] }
 0x12f   :  { %949 = vrot.lane.b32.xlu0 %v2776_v8, %s1843_s10 }
 0x130   :  { %v2796_v20 = vpop.permute.xlu1 %582 }
 0x131   :  { %4517 = vst [vmem:[#allocation98_spill] sm:$0xff] %v2796_v20  ;;  %v2798_v7 = vpop.permute.xlu0 %580 }
 0x132   :  { %4518 = vst [vmem:[#allocation99_spill] sm:$0xff] %v2798_v7  ;;  %955 = vrot.lane.b32.xlu1 %v2789_v11, %s1843_s10  ;;  %v2825_v7 = vld [vmem:[%s4377_s0 + $0x1d8] sm:$0xff] }
 0x133   :  { %953 = vrot.lane.b32.xlu0 %v2794_v6, %s1843_s10 }
 0x134   :  { %v2814_v23 = vpop.permute.xlu1 %586 }
 0x135   :  { %4519 = vst [vmem:[#allocation100_spill] sm:$0xff] %v2814_v23  ;;  %v2816_v20 = vpop.permute.xlu0 %584 }
 0x136   :  { %4520 = vst [vmem:[#allocation101_spill] sm:$0xff] %v2816_v20  ;;  %959 = vrot.lane.b32.xlu1 %v2807_v15, %s1843_s10  ;;  %v2843_v20 = vld [vmem:[%s4377_s0 + $0x1f8] sm:$0xff] }
 0x137   :  { %957 = vrot.lane.b32.xlu0 %v2812_v22, %s1843_s10 }
 0x138   :  { %v2832_v27 = vpop.permute.xlu1 %590 }
 0x139   :  { %4521 = vst [vmem:[#allocation102_spill] sm:$0xff] %v2832_v27  ;;  %v2834_v23 = vpop.permute.xlu0 %588 }
 0x13a   :  { %4522 = vst [vmem:[#allocation103_spill] sm:$0xff] %v2834_v23  ;;  %963 = vrot.lane.b32.xlu1 %v2825_v7, %s1843_s10  ;;  %v2861_v23 = vld [vmem:[%s4377_s0 + $0x218] sm:$0xff] }
 0x13b   :  { %961 = vrot.lane.b32.xlu0 %v2830_v5, %s1843_s10 }
 0x13c   :  { %v2850_v2 = vpop.permute.xlu1 %594 }
 0x13d   :  { %4523 = vst [vmem:[#allocation104_spill] sm:$0xff] %v2850_v2  ;;  %v2852_v27 = vpop.permute.xlu0 %592 }
 0x13e   :  { %4524 = vst [vmem:[#allocation105_spill] sm:$0xff] %v2852_v27  ;;  %967 = vrot.lane.b32.xlu1 %v2843_v20, %s1843_s10  ;;  %v2879_v27 = vld [vmem:[%s4377_s0 + $0x238] sm:$0xff] }
 0x13f   :  { %965 = vrot.lane.b32.xlu0 %v2848_v4, %s1843_s10 }
 0x140   :  { %v2868_v36 = vpop.permute.xlu1 %598 }
 0x141   :  { %4526 = vst [vmem:[#allocation107_spill] sm:$0xff] %v2868_v36  ;;  %v2870_v2 = vpop.permute.xlu0 %596 }
 0x142   :  { %4527 = vst [vmem:[#allocation108_spill] sm:$0xff] %v2870_v2  ;;  %971 = vrot.lane.b32.xlu1 %v2861_v23, %s1843_s10  ;;  %v2897_v2 = vld [vmem:[%s4377_s0 + $0x258] sm:$0xff] }
 0x143   :  { %969 = vrot.lane.b32.xlu0 %v2866_v0, %s1843_s10  ;;  %v3136_v0 = vld [vmem:[%s4377_s0 + $0x3e8] sm:$0xff] }
 0x144   :  { %v2886_v3 = vpop.permute.xlu1 %602  ;;  %4562 = vst [vmem:[#allocation143_spill] sm:$0xff] %v3136_v0 }
 0x145   :  { %4528 = vst [vmem:[#allocation109_spill] sm:$0xff] %v2886_v3  ;;  %v2888_v36 = vpop.permute.xlu0 %600 }
 0x146   :  { %4529 = vst [vmem:[#allocation110_spill] sm:$0xff] %v2888_v36  ;;  %975 = vrot.lane.b32.xlu1 %v2879_v27, %s1843_s10  ;;  %v2915_v36 = vld [vmem:[%s4377_s0 + $0x278] sm:$0xff] }
 0x147   :  { %973 = vrot.lane.b32.xlu0 %v2884_v31, %s1843_s10 }
 0x148   :  { %v2904_v38 = vpop.permute.xlu1 %606 }
 0x149   :  { %4530 = vst [vmem:[#allocation111_spill] sm:$0xff] %v2904_v38  ;;  %v2906_v3 = vpop.permute.xlu0 %604 }
 0x14a   :  { %4531 = vst [vmem:[#allocation112_spill] sm:$0xff] %v2906_v3  ;;  %979 = vrot.lane.b32.xlu1 %v2897_v2, %s1843_s10  ;;  %v2933_v3 = vld [vmem:[%s4377_s0 + $0x298] sm:$0xff] }
 0x14b   :  { %977 = vrot.lane.b32.xlu0 %v2902_v1, %s1843_s10 }
 0x14c   :  { %v2922_v58 = vpop.permute.xlu1 %610 }
 0x14d   :  { %4532 = vst [vmem:[#allocation113_spill] sm:$0xff] %v2922_v58  ;;  %v2924_v38 = vpop.permute.xlu0 %608 }
 0x14e   :  { %4533 = vst [vmem:[#allocation114_spill] sm:$0xff] %v2924_v38  ;;  %983 = vrot.lane.b32.xlu1 %v2915_v36, %s1843_s10  ;;  %v2951_v38 = vld [vmem:[%s4377_s0 + $0x2b8] sm:$0xff] }
 0x14f   :  { %981 = vrot.lane.b32.xlu0 %v2920_v25, %s1843_s10 }
 0x150   :  { %v2940_v42 = vpop.permute.xlu1 %614 }
 0x151   :  { %4535 = vst [vmem:[#allocation116_spill] sm:$0xff] %v2940_v42  ;;  %v2942_v58 = vpop.permute.xlu0 %612 }
 0x152   :  { %4536 = vst [vmem:[#allocation117_spill] sm:$0xff] %v2942_v58  ;;  %987 = vrot.lane.b32.xlu1 %v2933_v3, %s1843_s10  ;;  %v2969_v58 = vld [vmem:[%s4377_s0 + $0x2d8] sm:$0xff] }
 0x153   :  { %985 = vrot.lane.b32.xlu0 %v2938_v57, %s1843_s10 }
 0x154   :  { %v2958_v63 = vpop.permute.xlu1 %618 }
 0x155   :  { %4537 = vst [vmem:[#allocation118_spill] sm:$0xff] %v2958_v63  ;;  %v2960_v42 = vpop.permute.xlu0 %616 }
 0x156   :  { %4538 = vst [vmem:[#allocation119_spill] sm:$0xff] %v2960_v42  ;;  %991 = vrot.lane.b32.xlu1 %v2951_v38, %s1843_s10  ;;  %v2987_v42 = vld [vmem:[%s4377_s0 + $0x2f8] sm:$0xff] }
 0x157   :  { %989 = vrot.lane.b32.xlu0 %v2956_v28, %s1843_s10 }
 0x158   :  { %v2976_v56 = vpop.permute.xlu1 %622 }
 0x159   :  { %4539 = vst [vmem:[#allocation120_spill] sm:$0xff] %v2976_v56  ;;  %v2978_v63 = vpop.permute.xlu0 %620 }
 0x15a   :  { %4540 = vst [vmem:[#allocation121_spill] sm:$0xff] %v2978_v63  ;;  %995 = vrot.lane.b32.xlu1 %v2969_v58, %s1843_s10  ;;  %v3005_v63 = vld [vmem:[%s4377_s0 + $0x318] sm:$0xff] }
 0x15b   :  { %993 = vrot.lane.b32.xlu0 %v2974_v60, %s1843_s10 }
 0x15c   :  { %v2994_v46 = vpop.permute.xlu1 %626 }
 0x15d   :  { %4541 = vst [vmem:[#allocation122_spill] sm:$0xff] %v2994_v46  ;;  %v2996_v56 = vpop.permute.xlu0 %624 }
 0x15e   :  { %4542 = vst [vmem:[#allocation123_spill] sm:$0xff] %v2996_v56  ;;  %999 = vrot.lane.b32.xlu1 %v2987_v42, %s1843_s10  ;;  %v3023_v56 = vld [vmem:[%s4377_s0 + $0x338] sm:$0xff] }
 0x15f   :  { %997 = vrot.lane.b32.xlu0 %v2992_v32, %s1843_s10 }
 0x160   :  { %v3012_v37 = vpop.permute.xlu1 %630 }
 0x161   :  { %4544 = vst [vmem:[#allocation125_spill] sm:$0xff] %v3012_v37  ;;  %v3014_v46 = vpop.permute.xlu0 %628 }
 0x162   :  { %4545 = vst [vmem:[#allocation126_spill] sm:$0xff] %v3014_v46  ;;  %1003 = vrot.lane.b32.xlu1 %v3005_v63, %s1843_s10  ;;  %v3041_v46 = vld [vmem:[%s4377_s0 + $0x358] sm:$0xff] }
 0x163   :  { %1001 = vrot.lane.b32.xlu0 %v3010_v47, %s1843_s10  ;;  %v3064_v47 = vld [vmem:[%s4377_s0 + $0x368] sm:$0xff] }
 0x164   :  { %v3030_v61 = vpop.permute.xlu1 %634 }
 0x165   :  { %4546 = vst [vmem:[#allocation127_spill] sm:$0xff] %v3030_v61  ;;  %v3032_v37 = vpop.permute.xlu0 %632 }
 0x166   :  { %4547 = vst [vmem:[#allocation128_spill] sm:$0xff] %v3032_v37  ;;  %1007 = vrot.lane.b32.xlu1 %v3023_v56, %s1843_s10  ;;  %v3059_v37 = vld [vmem:[%s4377_s0 + $0x378] sm:$0xff] }
 0x167   :  { %1005 = vrot.lane.b32.xlu0 %v3028_v55, %s1843_s10 }
 0x168   :  { %v3048_v49 = vpop.permute.xlu1 %638 }
 0x169   :  { %4548 = vst [vmem:[#allocation129_spill] sm:$0xff] %v3048_v49  ;;  %v3050_v61 = vpop.permute.xlu0 %636 }
 0x16a   :  { %4549 = vst [vmem:[#allocation130_spill] sm:$0xff] %v3050_v61  ;;  %1011 = vrot.lane.b32.xlu1 %v3041_v46, %s1843_s10  ;;  %v3077_v61 = vld [vmem:[%s4377_s0 + $0x398] sm:$0xff] }
 0x16b   :  { %1009 = vrot.lane.b32.xlu0 %v3046_v43, %s1843_s10 }
 0x16c   :  { %v3066_v48 = vpop.permute.xlu1 %642 }
 0x16d   :  { %4550 = vst [vmem:[#allocation131_spill] sm:$0xff] %v3066_v48  ;;  %v3068_v49 = vpop.permute.xlu0 %640 }
 0x16e   :  { %4551 = vst [vmem:[#allocation132_spill] sm:$0xff] %v3068_v49  ;;  %1015 = vrot.lane.b32.xlu1 %v3059_v37, %s1843_s10  ;;  %v3095_v49 = vld [vmem:[%s4377_s0 + $0x3b8] sm:$0xff] }
 0x16f   :  { %1013 = vrot.lane.b32.xlu0 %v3064_v47, %s1843_s10 }
 0x170   :  { %v3084_v62 = vpop.permute.xlu1 %646 }
 0x171   :  { %4553 = vst [vmem:[#allocation134_spill] sm:$0xff] %v3084_v62  ;;  %v3086_v48 = vpop.permute.xlu0 %644 }
 0x172   :  { %4554 = vst [vmem:[#allocation135_spill] sm:$0xff] %v3086_v48  ;;  %1019 = vrot.lane.b32.xlu1 %v3077_v61, %s1843_s10  ;;  %v3113_v48 = vld [vmem:[%s4377_s0 + $0x3d8] sm:$0xff] }
 0x173   :  { %1017 = vrot.lane.b32.xlu0 %v3082_v50, %s1843_s10  ;;  %4558 = vst [vmem:[#allocation139_spill] sm:$0xff] %v3113_v48  ;;  %v3118_v50 = vld [vmem:[%s4377_s0 + $0x3c8] sm:$0xff] }
 0x174   :  { %v3102_v54 = vpop.permute.xlu1 %907  ;;  %4559 = vst [vmem:[#allocation140_spill] sm:$0xff] %v3118_v50 }
 0x175   :  { %4556 = vst [vmem:[#allocation137_spill] sm:$0xff] %v3102_v54  ;;  %v3104_v62 = vpop.permute.xlu0 %905 }
 0x176   :  { %4557 = vst [vmem:[#allocation138_spill] sm:$0xff] %v3104_v62  ;;  %1023 = vrot.lane.b32.xlu1 %v3095_v49, %s1843_s10  ;;  %v3131_v62 = vld [vmem:[%s4377_s0 + $0x3f8] sm:$0xff] }
 0x177   :  { %1021 = vrot.lane.b32.xlu0 %v3100_v45, %s1843_s10  ;;  %v1164_v45 = vrot.slane %v2591_v51, 7 }
 0x178   :  { %v3120_v57 = vpop.permute.xlu1 %911 }
 0x179   :  { %4560 = vst [vmem:[#allocation141_spill] sm:$0xff] %v3120_v57  ;;  %v3122_v54 = vpop.permute.xlu0 %909 }
 0x17a   :  { %4561 = vst [vmem:[#allocation142_spill] sm:$0xff] %v3122_v54  ;;  %1027 = vrot.lane.b32.xlu1 %v3113_v48, %s1843_s10  ;;  %v1162_v54 = vrot.slane %v2573_v40, 7  ;;  %v1166_v40 = vrot.slane %v2609_v41, 7 }
 0x17b   :  { %1025 = vrot.lane.b32.xlu0 %v3118_v50, %s1843_s10 }
 0x17c   :  { %v3138_v53 = vpop.permute.xlu1 %915 }
 0x17d   :  { %4563 = vst [vmem:[#allocation144_spill] sm:$0xff] %v3138_v53  ;;  %v3140_v57 = vpop.permute.xlu0 %913  ;;  %v1163_v53 = vrot.slane %v2596_v39, 7 }
 0x17e   :  { %4564 = vst [vmem:[#allocation145_spill] sm:$0xff] %v3140_v57  ;;  %1031 = vrot.lane.b32.xlu1 %v3131_v62, %s1843_s10 }
 0x17f   :  { %1029 = vrot.lane.b32.xlu0 %v3136_v0, %s1843_s10  ;;  %v1165_v0 = vrot.slane %v2614_v35, 7 }
 0x180   :  { %v3148_v50 = vpop.permute.xlu1 %919 }
 0x181   :  { %4565 = vst [vmem:[#allocation146_spill] sm:$0xff] %v3148_v50  ;;  %v3150_v48 = vpop.permute.xlu0 %917 }
 0x182   :  { %4566 = vst [vmem:[#allocation147_spill] sm:$0xff] %v3150_v48  ;;  %1227 = vrot.lane.b32.xlu1 %v1162_v54, %s1843_s10  ;;  %v1168_v54 = vrot.slane %v2627_v44, 7 }
 0x183   :  { %1225 = vrot.lane.b32.xlu0 %v1161_v52, %s1843_s10  ;;  %v1167_v52 = vrot.slane %v2632_v30, 7 }
 0x184   :  { %v3156_v57 = vpop.permute.xlu1 %923 }
 0x185   :  { %4567 = vst [vmem:[#allocation148_spill] sm:$0xff] %v3156_v57  ;;  %v3158_v59 = vpop.permute.xlu0 %921 }
 0x186   :  { %4568 = vst [vmem:[#allocation149_spill] sm:$0xff] %v3158_v59  ;;  %1231 = vrot.lane.b32.xlu1 %v1164_v45, %s1843_s10  ;;  %v1170_v45 = vrot.slane %v2645_v33, 7 }
 0x187   :  { %1229 = vrot.lane.b32.xlu0 %v1163_v53, %s1843_s10  ;;  %v1169_v53 = vrot.slane %v2650_v26, 7 }
 0x188   :  { %v3164_v48 = vpop.permute.xlu1 %927 }
 0x189   :  { %4569 = vst [vmem:[#allocation150_spill] sm:$0xff] %v3164_v48  ;;  %v3166_v50 = vpop.permute.xlu0 %925 }
 0x18a   :  { %4570 = vst [vmem:[#allocation151_spill] sm:$0xff] %v3166_v50  ;;  %1235 = vrot.lane.b32.xlu1 %v1166_v40, %s1843_s10  ;;  %v1172_v40 = vrot.slane %v2663_v18, 7 }
 0x18b   :  { %1233 = vrot.lane.b32.xlu0 %v1165_v0, %s1843_s10  ;;  %v1171_v0 = vrot.slane %v2668_v17, 7 }
 0x18c   :  { %v3172_v59 = vpop.permute.xlu1 %931 }
 0x18d   :  { %4571 = vst [vmem:[#allocation152_spill] sm:$0xff] %v3172_v59  ;;  %v3174_v57 = vpop.permute.xlu0 %929 }
 0x18e   :  { %4572 = vst [vmem:[#allocation153_spill] sm:$0xff] %v3174_v57  ;;  %1239 = vrot.lane.b32.xlu1 %v1168_v54, %s1843_s10  ;;  %v1174_v54 = vrot.slane %v2681_v29, 7 }
 0x18f   :  { %1237 = vrot.lane.b32.xlu0 %v1167_v52, %s1843_s10  ;;  %v1173_v52 = vrot.slane %v2686_v34, 7 }
 0x190   :  { %v3180_v50 = vpop.permute.xlu1 %935 }
 0x191   :  { %4573 = vst [vmem:[#allocation154_spill] sm:$0xff] %v3180_v50  ;;  %v3182_v48 = vpop.permute.xlu0 %933 }
 0x192   :  { %4574 = vst [vmem:[#allocation155_spill] sm:$0xff] %v3182_v48  ;;  %1243 = vrot.lane.b32.xlu1 %v1170_v45, %s1843_s10  ;;  %v1176_v45 = vrot.slane %v2699_v24, 7 }
 0x193   :  { %1241 = vrot.lane.b32.xlu0 %v1169_v53, %s1843_s10  ;;  %v1175_v53 = vrot.slane %v2704_v21, 7 }
 0x194   :  { %v3188_v57 = vpop.permute.xlu1 %939 }
 0x195   :  { %4575 = vst [vmem:[#allocation156_spill] sm:$0xff] %v3188_v57  ;;  %v3190_v59 = vpop.permute.xlu0 %937 }
 0x196   :  { %4576 = vst [vmem:[#allocation157_spill] sm:$0xff] %v3190_v59  ;;  %1247 = vrot.lane.b32.xlu1 %v1172_v40, %s1843_s10  ;;  %v1178_v40 = vrot.slane %v2717_v19, 7 }
 0x197   :  { %1245 = vrot.lane.b32.xlu0 %v1171_v0, %s1843_s10  ;;  %v1177_v0 = vrot.slane %v2722_v16, 7 }
 0x198   :  { %v3196_v48 = vpop.permute.xlu1 %943 }
 0x199   :  { %4577 = vst [vmem:[#allocation158_spill] sm:$0xff] %v3196_v48  ;;  %v3198_v50 = vpop.permute.xlu0 %941 }
 0x19a   :  { %4578 = vst [vmem:[#allocation159_spill] sm:$0xff] %v3198_v50  ;;  %1251 = vrot.lane.b32.xlu1 %v1174_v54, %s1843_s10  ;;  %v1180_v54 = vrot.slane %v2735_v13, 7 }
 0x19b   :  { %1249 = vrot.lane.b32.xlu0 %v1173_v52, %s1843_s10  ;;  %v1179_v52 = vrot.slane %v2740_v12, 7 }
 0x19c   :  { %v3204_v59 = vpop.permute.xlu1 %947 }
 0x19d   :  { %4579 = vst [vmem:[#allocation160_spill] sm:$0xff] %v3204_v59  ;;  %v3206_v57 = vpop.permute.xlu0 %945 }
 0x19e   :  { %4580 = vst [vmem:[#allocation161_spill] sm:$0xff] %v3206_v57  ;;  %1255 = vrot.lane.b32.xlu1 %v1176_v45, %s1843_s10  ;;  %v1182_v45 = vrot.slane %v2753_v9, 7 }
 0x19f   :  { %1253 = vrot.lane.b32.xlu0 %v1175_v53, %s1843_s10  ;;  %v1181_v53 = vrot.slane %v2758_v14, 7  ;;  %v1186_v14 = vrot.slane %v2789_v11, 7 }
 0x1a0   :  { %v3212_v50 = vpop.permute.xlu1 %951 }
 0x1a1   :  { %4581 = vst [vmem:[#allocation162_spill] sm:$0xff] %v3212_v50  ;;  %v3214_v48 = vpop.permute.xlu0 %949 }
 0x1a2   :  { %4582 = vst [vmem:[#allocation163_spill] sm:$0xff] %v3214_v48  ;;  %1259 = vrot.lane.b32.xlu1 %v1178_v40, %s1843_s10  ;;  %v1184_v40 = vrot.slane %v2771_v10, 7 }
 0x1a3   :  { %1257 = vrot.lane.b32.xlu0 %v1177_v0, %s1843_s10  ;;  %v1183_v0 = vrot.slane %v2776_v8, 7  ;;  %v1188_v8 = vrot.slane %v2807_v15, 7 }
 0x1a4   :  { %v3220_v57 = vpop.permute.xlu1 %955 }
 0x1a5   :  { %v3222_v59 = vpop.permute.xlu0 %953 }
 0x1a6   :  { %4583 = vst [vmem:[#allocation164_spill] sm:$0xff] %v3222_v59  ;;  %1263 = vrot.lane.b32.xlu1 %v1180_v54, %s1843_s10  ;;  %v1185_v54 = vrot.slane %v2794_v6, 7  ;;  %v1190_v6 = vrot.slane %v2825_v7, 7 }
 0x1a7   :  { %1261 = vrot.lane.b32.xlu0 %v1179_v52, %s1843_s10 }
 0x1a8   :  { %v3228_v48 = vpop.permute.xlu1 %959 }
 0x1a9   :  { %v3230_v50 = vpop.permute.xlu0 %957 }
 0x1aa   :  { %1267 = vrot.lane.b32.xlu1 %v1182_v45, %s1843_s10  ;;  %v1187_v45 = vrot.slane %v2812_v22, 7  ;;  %v1192_v22 = vrot.slane %v2843_v20, 7 }
 0x1ab   :  { %1265 = vrot.lane.b32.xlu0 %v1181_v53, %s1843_s10 }
 0x1ac   :  { %v3236_v59 = vpop.permute.xlu1 %963 }
 0x1ad   :  { %v3238_v9 = vpop.permute.xlu0 %961 }
 0x1ae   :  { %1271 = vrot.lane.b32.xlu1 %v1184_v40, %s1843_s10  ;;  %v1189_v40 = vrot.slane %v2830_v5, 7  ;;  %v1194_v5 = vrot.slane %v2861_v23, 7 }
 0x1af   :  { %1269 = vrot.lane.b32.xlu0 %v1183_v0, %s1843_s10 }
 0x1b0   :  { %v3244_v52 = vpop.permute.xlu1 %967 }
 0x1b1   :  { %v3246_v10 = vpop.permute.xlu0 %965 }
 0x1b2   :  { %1275 = vrot.lane.b32.xlu1 %v1186_v14, %s1843_s10  ;;  %v1191_v14 = vrot.slane %v2848_v4, 7  ;;  %v1196_v4 = vrot.slane %v2879_v27, 7 }
 0x1b3   :  { %1273 = vrot.lane.b32.xlu0 %v1185_v54, %s1843_s10 }
 0x1b4   :  { %v3252_v53 = vpop.permute.xlu1 %971 }
 0x1b5   :  { %v3254_v11 = vpop.permute.xlu0 %969 }
 0x1b6   :  { %4584 = vst [vmem:[#allocation165_spill] sm:$0xff] %v3254_v11  ;;  %1279 = vrot.lane.b32.xlu1 %v1188_v8, %s1843_s10  ;;  %v1195_v8 = vrot.slane %v2884_v31, 7  ;;  %v1198_v31 = vrot.slane %v2897_v2, 7 }
 0x1b7   :  { %1277 = vrot.lane.b32.xlu0 %v1187_v45, %s1843_s10 }
 0x1b8   :  { %v3260_v0 = vpop.permute.xlu1 %975 }
 0x1b9   :  { %v3262_v15 = vpop.permute.xlu0 %973 }
 0x1ba   :  { %1283 = vrot.lane.b32.xlu1 %v1190_v6, %s1843_s10  ;;  %v1197_v6 = vrot.slane %v2902_v1, 7  ;;  %v1200_v1 = vrot.slane %v2915_v36, 7 }
 0x1bb   :  { %1281 = vrot.lane.b32.xlu0 %v1189_v40, %s1843_s10 }
 0x1bc   :  { %v3268_v54 = vpop.permute.xlu1 %979 }
 0x1bd   :  { %v3270_v7 = vpop.permute.xlu0 %977 }
 0x1be   :  { %1287 = vrot.lane.b32.xlu1 %v1192_v22, %s1843_s10  ;;  %v1199_v22 = vrot.slane %v2920_v25, 7  ;;  %v1204_v25 = vrot.slane %v2951_v38, 7 }
 0x1bf   :  { %1285 = vrot.lane.b32.xlu0 %v1191_v14, %s1843_s10 }
 0x1c0   :  { %v3276_v45 = vpop.permute.xlu1 %983 }
 0x1c1   :  { %v3278_v20 = vpop.permute.xlu0 %981 }
 0x1c2   :  { %1293 = vrot.lane.b32.xlu1 %v1195_v8, %s1843_s10 }
 0x1c3   :  { %1291 = vrot.lane.b32.xlu0 %v1194_v5, %s1843_s10  ;;  %v1202_v5 = vrot.slane %v2933_v3, 7  ;;  %v1206_v3 = vrot.slane %v2969_v58, 7 }
 0x1c4   :  { %v3284_v40 = vpop.permute.xlu1 %987 }
 0x1c5   :  { %4585 = vst [vmem:[#allocation166_spill] sm:$0xff] %v3284_v40  ;;  %v3286_v23 = vpop.permute.xlu0 %985 }
 0x1c6   :  { %4586 = vst [vmem:[#allocation167_spill] sm:$0xff] %v3286_v23  ;;  %1297 = vrot.lane.b32.xlu1 %v1197_v6, %s1843_s10 }
 0x1c7   :  { %1295 = vrot.lane.b32.xlu0 %v1196_v4, %s1843_s10  ;;  %v1203_v4 = vrot.slane %v2956_v28, 7  ;;  %v1208_v28 = vrot.slane %v2987_v42, 7 }
 0x1c8   :  { %v3292_v14 = vpop.permute.xlu1 %991 }
 0x1c9   :  { %v3294_v27 = vpop.permute.xlu0 %989 }
 0x1ca   :  { %1301 = vrot.lane.b32.xlu1 %v1199_v22, %s1843_s10 }
 0x1cb   :  { %1299 = vrot.lane.b32.xlu0 %v1198_v31, %s1843_s10  ;;  %v1205_v31 = vrot.slane %v2974_v60, 7  ;;  %v1210_v60 = vrot.slane %v3005_v63, 7 }
 0x1cc   :  { %v3300_v8 = vpop.permute.xlu1 %995 }
 0x1cd   :  { %4587 = vst [vmem:[#allocation168_spill] sm:$0xff] %v3300_v8  ;;  %v3302_v2 = vpop.permute.xlu0 %993  ;;  %v4625_v8 = vld [vmem:[#allocation9_spill] sm:$0xff] }
 0x1ce   :  { %4588 = vst [vmem:[#allocation169_spill] sm:$0xff] %v3302_v2  ;;  %1307 = vrot.lane.b32.xlu1 %v1202_v5, %s1843_s10 }
 0x1cf   :  { %1303 = vrot.lane.b32.xlu0 %v1200_v1, %s1843_s10  ;;  %v1207_v1 = vrot.slane %v2992_v32, 7  ;;  %v1212_v32 = vrot.slane %v3023_v56, 7 }
 0x1d0   :  { %v3308_v6 = vpop.permute.xlu1 %999 }
 0x1d1   :  { %4589 = vst [vmem:[#allocation170_spill] sm:$0xff] %v3308_v6  ;;  %v3310_v36 = vpop.permute.xlu0 %997 }
 0x1d2   :  { %4590 = vst [vmem:[#allocation171_spill] sm:$0xff] %v3310_v36  ;;  %1311 = vrot.lane.b32.xlu1 %v1204_v25, %s1843_s10  ;;  %v1211_v25 = vrot.slane %v3028_v55, 7  ;;  %v1214_v55 = vrot.slane %v3041_v46, 7 }
 0x1d3   :  { %1309 = vrot.lane.b32.xlu0 %v1203_v4, %s1843_s10 }
 0x1d4   :  { %v3316_v22 = vpop.permute.xlu1 %1003 }
 0x1d5   :  { %4591 = vst [vmem:[#allocation172_spill] sm:$0xff] %v3316_v22  ;;  %v3318_v38 = vpop.permute.xlu0 %1001 }
 0x1d6   :  { %4592 = vst [vmem:[#allocation173_spill] sm:$0xff] %v3318_v38  ;;  %1315 = vrot.lane.b32.xlu1 %v1206_v3, %s1843_s10  ;;  %v1213_v3 = vrot.slane %v3046_v43, 7  ;;  %v1216_v43 = vrot.slane %v3059_v37, 7 }
 0x1d7   :  { %1313 = vrot.lane.b32.xlu0 %v1205_v31, %s1843_s10 }
 0x1d8   :  { %v3324_v5 = vpop.permute.xlu1 %1007 }
 0x1d9   :  { %4593 = vst [vmem:[#allocation174_spill] sm:$0xff] %v3324_v5  ;;  %v3326_v58 = vpop.permute.xlu0 %1005 }
 0x1da   :  { %4594 = vst [vmem:[#allocation175_spill] sm:$0xff] %v3326_v58  ;;  %1319 = vrot.lane.b32.xlu1 %v1208_v28, %s1843_s10  ;;  %v1215_v28 = vrot.slane %v3064_v47, 7  ;;  %v1220_v47 = vrot.slane %v3095_v49, 7 }
 0x1db   :  { %1317 = vrot.lane.b32.xlu0 %v1207_v1, %s1843_s10 }
 0x1dc   :  { %v3332_v4 = vpop.permute.xlu1 %1011 }
 0x1dd   :  { %4595 = vst [vmem:[#allocation176_spill] sm:$0xff] %v3332_v4  ;;  %v3334_v42 = vpop.permute.xlu0 %1009  ;;  %v4621_v4 = vld [vmem:[#allocation137_spill] sm:$0xff] }
 0x1de   :  { %4596 = vst [vmem:[#allocation177_spill] sm:$0xff] %v3334_v42  ;;  %1325 = vrot.lane.b32.xlu1 %v1211_v25, %s1843_s10  ;;  %v4622_v42 = vld [vmem:[#allocation72_spill] sm:$0xff] }
 0x1df   :  { %1323 = vrot.lane.b32.xlu0 %v1210_v60, %s1843_s10  ;;  %v1218_v60 = vrot.slane %v3077_v61, 7  ;;  %v4606_v61 = vld [vmem:[#allocation139_spill] sm:$0xff]  ;;  %v1098_v5 = vmax.f32 %v4622_v42, %v4621_v4  ;;  %v4627_v4 = vld [vmem:[#allocation16_spill] sm:$0xff]  ;;  %v4628_v42 = vld [vmem:[#allocation13_spill] sm:$0xff] }
 0x1e0   :  { %v3340_v31 = vpop.permute.xlu1 %1015 }
 0x1e1   :  { %4597 = vst [vmem:[#allocation178_spill] sm:$0xff] %v3340_v31  ;;  %v3342_v63 = vpop.permute.xlu0 %1013  ;;  %v4619_v31 = vld [vmem:[#allocation106_spill] sm:$0xff] }
 0x1e2   :  { %4598 = vst [vmem:[#allocation179_spill] sm:$0xff] %v3342_v63  ;;  %1329 = vrot.lane.b32.xlu1 %v1213_v3, %s1843_s10  ;;  %v4603_v3 = vld [vmem:[#allocation136_spill] sm:$0xff] }
 0x1e3   :  { %1327 = vrot.lane.b32.xlu0 %v1212_v32, %s1843_s10  ;;  %v1219_v32 = vrot.slane %v4603_v3, 7 }
 0x1e4   :  { %v3348_v1 = vpop.permute.xlu1 %1019 }
 0x1e5   :  { %4599 = vst [vmem:[#allocation180_spill] sm:$0xff] %v3348_v1  ;;  %v3350_v56 = vpop.permute.xlu0 %1017 }
 0x1e6   :  { %4600 = vst [vmem:[#allocation181_spill] sm:$0xff] %v3350_v56  ;;  %1333 = vrot.lane.b32.xlu1 %v1215_v28, %s1843_s10  ;;  %v1222_v28 = vrot.slane %v4606_v61, 7  ;;  %v4607_v56 = vld [vmem:[#allocation140_spill] sm:$0xff]  ;;  %v1736_v61 = vld [vmem:[%s4377_s0] sm:$0xff] }
 0x1e7   :  { %1331 = vrot.lane.b32.xlu0 %v1214_v55, %s1843_s10  ;;  %v1221_v55 = vrot.slane %v4607_v56, 7  ;;  %v4611_v56 = vld [vmem:[#allocation8_spill] sm:$0xff] }
 0x1e8   :  { %v3356_v25 = vpop.permute.xlu1 %1023  ;;  %v392_v11 = vmax.f32 %v1736_v61, %v4611_v56  ;;  %v1738_v56 = vld [vmem:[%s4377_s0 + $0x10] sm:$0xff] }
 0x1e9   :  { %4601 = vst [vmem:[#allocation182_spill] sm:$0xff] %v3356_v25  ;;  %v3358_v46 = vpop.permute.xlu0 %1021 }
 0x1ea   :  { %4602 = vst [vmem:[#allocation183_spill] sm:$0xff] %v3358_v46  ;;  %1339 = vrot.lane.b32.xlu1 %v1218_v60, %s1843_s10  ;;  %v4610_v60 = vld [vmem:[#allocation7_spill] sm:$0xff] }
 0x1eb   :  { %1335 = vrot.lane.b32.xlu0 %v1216_v43, %s1843_s10  ;;  %v1735_v43 = vld [vmem:[%s4377_s0 + $0x20] sm:$0xff]  ;;  %v4618_v46 = vld [vmem:[#allocation15_spill] sm:$0xff] }
 0x1ec   :  { %v3364_v38 = vpop.permute.xlu1 %1027  ;;  %v394_v23 = vmax.f32 %v1735_v43, %v4610_v60  ;;  %v1737_v43 = vld [vmem:[%s4377_s0 + $0x30] sm:$0xff]  ;;  %v4615_v60 = vld [vmem:[#allocation11_spill] sm:$0xff] }
 0x1ed   :  { %4604 = vst [vmem:[#allocation136_spill] sm:$0xff] %v3364_v38  ;;  %v3366_v37 = vpop.permute.xlu0 %1025  ;;  %v4614_v38 = vld [vmem:[#allocation143_spill] sm:$0xff]  ;;  %v395_v61 = vmax.f32 %v1737_v43, %v4615_v60  ;;  %v1193_v43 = vrot.slane %v4619_v31, 7  ;;  %v4626_v31 = vld [vmem:[#allocation10_spill] sm:$0xff] }
 0x1ee   :  { %4605 = vst [vmem:[#allocation184_spill] sm:$0xff] %v3366_v37  ;;  %1343 = vrot.lane.b32.xlu1 %v1220_v47, %s1843_s10  ;;  %v4612_v47 = vld [vmem:[#allocation5_spill] sm:$0xff]  ;;  %v4613_v37 = vld [vmem:[#allocation6_spill] sm:$0xff]  ;;  %v1223_v1 = vrot.slane %v4614_v38, 7  ;;  %v4620_v60 = vld [vmem:[#allocation115_spill] sm:$0xff] }
 0x1ef   :  { %1341 = vrot.lane.b32.xlu0 %v1219_v32, %s1843_s10  ;;  %v714_v32 = vsel %vm712_vm0, -inf, %v4612_v47  ;;  %v4616_v47 = vld [vmem:[#allocation12_spill] sm:$0xff]  ;;  %v4617_v38 = vld [vmem:[#allocation14_spill] sm:$0xff]  ;;  %v1201_v63 = vrot.slane %v4620_v60, 7 }
 0x1f0   :  { %v3372_v49 = vpop.permute.xlu1 %1031 }
 0x1f1   :  { %4608 = vst [vmem:[#allocation139_spill] sm:$0xff] %v3372_v49  ;;  %v3374_v3 = vpop.permute.xlu0 %1029  ;;  %v713_v49 = vsel %vm712_vm0, -inf, %v4613_v37  ;;  %v393_v37 = vmax.f32 %v1738_v56, %v4616_v47  ;;  %v4623_v56 = vld [vmem:[#allocation138_spill] sm:$0xff]  ;;  %v4624_v47 = vld [vmem:[#allocation73_spill] sm:$0xff] }
 0x1f2   :  { %4609 = vst [vmem:[#allocation140_spill] sm:$0xff] %v3374_v3  ;;  %v1224_v3 = vrot.slane %v3131_v62, 7  ;;  %1347 = vrot.lane.b32.xlu1 %v1222_v28, %s1843_s10  ;;  %v1739_v62 = vld [vmem:[%s4377_s0 + $0x50] sm:$0xff]  ;;  %v1097_v22 = vmax.f32 %v4624_v47, %v4623_v56 }
 0x1f3   :  { %1345 = vrot.lane.b32.xlu0 %v1221_v55, %s1843_s10  ;;  %v397_v28 = vmax.f32 %v1739_v62, %v4617_v38  ;;  %v1740_v55 = vld [vmem:[%s4377_s0 + $0x40] sm:$0xff]  ;;  %v778_v6 = vmax.f32 %v393_v37, %v714_v32  ;;  %v777_v62 = vmax.f32 %v392_v11, %v713_v49  ;;  %v1741_v11 = vld [vmem:[%s4377_s0 + $0x70] sm:$0xff]  ;;  %v4629_v49 = vld [vmem:[#allocation71_spill] sm:$0xff] }
 0x1f4   :  { %v396_v25 = vmax.f32 %v1740_v55, %v4618_v46  ;;  %v1228_v58 = vpop.permute.xlu1 %1227  ;;  %v716_v46 = vsel %vm712_vm0, -inf, %v4625_v8  ;;  %v715_v55 = vsel %vm712_vm0, -inf, %v4626_v31  ;;  %v717_v8 = vsel %vm712_vm0, -inf, %v4629_v49  ;;  %v4630_v32 = vld [vmem:[#allocation141_spill] sm:$0xff] }
 0x1f5   :  { %v1226_v36 = vpop.permute.xlu0 %1225  ;;  %v1418_v38 = vsel %vm712_vm0, -inf, %v1228_v58  ;;  %v399_v58 = vmax.f32 %v1741_v11, %v4627_v4  ;;  %v780_v47 = vmax.f32 %v395_v61, %v716_v46  ;;  %v4632_v4 = vld [vmem:[#allocation133_spill] sm:$0xff] }
 0x1f6   :  { %v1417_v2 = vsel %vm712_vm0, -inf, %v1226_v36  ;;  %v1482_v60 = vmax.f32 %v1098_v5, %v1418_v38  ;;  %1351 = vrot.lane.b32.xlu1 %v1224_v3, %s1843_s10  ;;  %v718_v36 = vsel %vm712_vm0, -inf, %v4628_v42  ;;  %v779_v38 = vmax.f32 %v394_v23, %v715_v55  ;;  %v1742_v23 = vld [vmem:[%s4377_s0 + $0x60] sm:$0xff] }
 0x1f7   :  { %v1481_v40 = vmax.f32 %v1097_v22, %v1417_v2  ;;  %1349 = vrot.lane.b32.xlu0 %v1223_v1, %s1843_s10  ;;  %v1100_v2 = vmax.f32 %v2591_v51, %v4630_v32  ;;  %v4631_v22 = vld [vmem:[#allocation142_spill] sm:$0xff]  ;;  %v1217_v42 = vrot.slane %v4632_v4, 7  ;;  %v781_v46 = vmax.f32 %v396_v25, %v717_v8  ;;  %v4635_v32 = vld [vmem:[#allocation144_spill] sm:$0xff] }
 0x1f8   :  { %v1099_v5 = vmax.f32 %v2596_v39, %v4631_v22  ;;  %v1546_v1 = vmax.f32 %v778_v6, %v1482_v60  ;;  %v1232_v37 = vpop.permute.xlu1 %1231  ;;  %v4633_v6 = vld [vmem:[#allocation17_spill] sm:$0xff]  ;;  %v1102_v22 = vmax.f32 %v2609_v41, %v4635_v32 }
 0x1f9   :  { %v1545_v3 = vmax.f32 %v777_v62, %v1481_v40  ;;  %v1230_v56 = vpop.permute.xlu0 %1229  ;;  %v1420_v31 = vsel %vm712_vm0, -inf, %v1232_v37  ;;  %v398_v61 = vmax.f32 %v1742_v23, %v4633_v6  ;;  %v782_v62 = vmax.f32 %v397_v28, %v718_v36  ;;  %v4637_v37 = vld [vmem:[#allocation74_spill] sm:$0xff]  ;;  %v4638_v28 = vld [vmem:[#allocation75_spill] sm:$0xff] }
 0x1fa   :  { %v1419_v11 = vsel %vm712_vm0, -inf, %v1230_v56  ;;  %v1609_v49 = vmax.f32 %v1546_v1, %v1481_v40  ;;  %v1484_v51 = vmax.f32 %v1100_v2, %v1420_v31  ;;  %1305 = vrot.lane.b32.xlu1 %v1201_v63, %s1843_s10  ;;  %v4634_v40 = vld [vmem:[#allocation124_spill] sm:$0xff]  ;;  %v4636_v1 = vld [vmem:[#allocation145_spill] sm:$0xff]  ;;  %v720_v25 = vsel %vm712_vm0, -inf, %v4637_v37  ;;  %v4640_v23 = vld [vmem:[#allocation19_spill] sm:$0xff] }
 0x1fb   :  { %1666 = vst.msk [vmem:[%s4378_s1] sm:$0xff] %vm1665_vm1, %v1545_v3  ;;  %v1483_v39 = vmax.f32 %v1099_v5, %v1419_v11  ;;  %1289 = vrot.lane.b32.xlu0 %v1193_v43, %s1843_s10  ;;  %v1209_v55 = vrot.slane %v4634_v40, 7  ;;  %v1101_v2 = vmax.f32 %v2614_v35, %v4636_v1  ;;  %v719_v36 = vsel %vm712_vm0, -inf, %v4638_v28  ;;  %v4641_v40 = vld [vmem:[#allocation76_spill] sm:$0xff]  ;;  %v4644_v1 = vld [vmem:[#allocation147_spill] sm:$0xff] }
 0x1fc   :  { %1667 = vst.msk [vmem:[%s4378_s1 + $0x8] sm:$0xff] %vm1665_vm1, %v1609_v49  ;;  %v1548_v63 = vmax.f32 %v780_v47, %v1484_v51  ;;  %v1236_v5 = vpop.permute.xlu1 %1235  ;;  %v1743_v47 = vld [vmem:[%s4377_s0 + $0x90] sm:$0xff]  ;;  %v1744_v49 = vld [vmem:[%s4377_s0 + $0x80] sm:$0xff]  ;;  %v783_v37 = vmax.f32 %v398_v61, %v719_v36  ;;  %v4648_v36 = vld [vmem:[#allocation79_spill] sm:$0xff] }
 0x1fd   :  { %v1547_v43 = vmax.f32 %v779_v38, %v1483_v39  ;;  %v1234_v3 = vpop.permute.xlu0 %1233  ;;  %v1422_v41 = vsel %vm712_vm0, -inf, %v1236_v5  ;;  %v4639_v38 = vld [vmem:[#allocation18_spill] sm:$0xff]  ;;  %v400_v6 = vmax.f32 %v1744_v49, %v4640_v23  ;;  %v4645_v49 = vld [vmem:[#allocation148_spill] sm:$0xff] }
 0x1fe   :  { %v1421_v8 = vsel %vm712_vm0, -inf, %v1234_v3  ;;  %v1611_v56 = vmax.f32 %v1548_v63, %v1483_v39  ;;  %v1486_v31 = vmax.f32 %v1102_v22, %v1422_v41  ;;  %1337 = vrot.lane.b32.xlu1 %v1217_v42, %s1843_s10  ;;  %v401_v4 = vmax.f32 %v1743_v47, %v4639_v38  ;;  %v4642_v39 = vld [vmem:[#allocation77_spill] sm:$0xff]  ;;  %v4643_v42 = vld [vmem:[#allocation146_spill] sm:$0xff] }
 0x1ff   :  { %v1610_v35 = vmax.f32 %v1547_v43, %v1482_v60  ;;  %v1485_v11 = vmax.f32 %v1101_v2, %v1421_v8  ;;  %v722_v60 = vsel %vm712_vm0, -inf, %v4641_v40  ;;  %v721_v32 = vsel %vm712_vm0, -inf, %v4642_v39  ;;  %1321 = vrot.lane.b32.xlu0 %v1209_v55, %s1843_s10 }
 0x200   :  { %v1104_v22 = vmax.f32 %v2627_v44, %v4643_v42  ;;  %v1103_v2 = vmax.f32 %v2632_v30, %v4644_v1  ;;  %1669 = vst.msk [vmem:[%s4378_s1 + $0x18] sm:$0xff] %vm1665_vm1, %v1611_v56  ;;  %v1550_v63 = vmax.f32 %v782_v62, %v1486_v31  ;;  %v1240_v5 = vpop.permute.xlu1 %1239  ;;  %v784_v3 = vmax.f32 %v399_v58, %v720_v25  ;;  %v4646_v56 = vld [vmem:[#allocation149_spill] sm:$0xff]  ;;  %v4647_v25 = vld [vmem:[#allocation78_spill] sm:$0xff]  ;;  %v4649_v42 = vld [vmem:[#allocation20_spill] sm:$0xff] }
 0x201   :  { %1668 = vst.msk [vmem:[%s4378_s1 + $0x10] sm:$0xff] %vm1665_vm1, %v1610_v35  ;;  %v1549_v43 = vmax.f32 %v781_v46, %v1485_v11  ;;  %v1238_v55 = vpop.permute.xlu0 %1237  ;;  %v1424_v44 = vsel %vm712_vm0, -inf, %v1240_v5  ;;  %v786_v35 = vmax.f32 %v401_v4, %v722_v60  ;;  %v785_v38 = vmax.f32 %v400_v6, %v721_v32  ;;  %v1745_v32 = vld [vmem:[%s4377_s0 + $0xb0] sm:$0xff]  ;;  %v1746_v1 = vld [vmem:[%s4377_s0 + $0xa0] sm:$0xff] }
 0x202   :  { %v1423_v30 = vsel %vm712_vm0, -inf, %v1238_v55  ;;  %v1613_v41 = vmax.f32 %v1550_v63, %v1485_v11  ;;  %v1488_v8 = vmax.f32 %v1104_v22, %v1424_v44  ;;  %v1106_v23 = vmax.f32 %v2645_v33, %v4645_v49  ;;  %v4652_v55 = vld [vmem:[#allocation80_spill] sm:$0xff] }
 0x203   :  { %v1612_v28 = vmax.f32 %v1549_v43, %v1484_v51  ;;  %v1487_v47 = vmax.f32 %v1103_v2, %v1423_v30  ;;  %v1105_v62 = vmax.f32 %v2650_v26, %v4646_v56  ;;  %v724_v33 = vsel %vm712_vm0, -inf, %v4647_v25  ;;  %v4650_v2 = vld [vmem:[#allocation21_spill] sm:$0xff]  ;;  %v1747_v43 = vld [vmem:[%s4377_s0 + $0xd0] sm:$0xff]  ;;  %v4654_v30 = vld [vmem:[#allocation151_spill] sm:$0xff] }
 0x204   :  { %1671 = vst.msk [vmem:[%s4378_s1 + $0x28] sm:$0xff] %vm1665_vm1, %v1613_v41  ;;  %v1552_v58 = vmax.f32 %v784_v3, %v1488_v8  ;;  %v1244_v61 = vpop.permute.xlu1 %1243  ;;  %v723_v26 = vsel %vm712_vm0, -inf, %v4648_v36  ;;  %v403_v22 = vmax.f32 %v1745_v32, %v4649_v42  ;;  %v402_v63 = vmax.f32 %v1746_v1, %v4650_v2  ;;  %v4657_v36 = vld [vmem:[#allocation24_spill] sm:$0xff]  ;;  %v4660_v32 = vld [vmem:[#allocation153_spill] sm:$0xff] }
 0x205   :  { %1670 = vst.msk [vmem:[%s4378_s1 + $0x20] sm:$0xff] %vm1665_vm1, %v1612_v28  ;;  %v1551_v51 = vmax.f32 %v783_v37, %v1487_v47  ;;  %v1242_v46 = vpop.permute.xlu0 %1241  ;;  %v1426_v11 = vsel %vm712_vm0, -inf, %v1244_v61  ;;  %v726_v3 = vsel %vm712_vm0, -inf, %v4652_v55  ;;  %v4653_v37 = vld [vmem:[#allocation150_spill] sm:$0xff]  ;;  %v1107_v28 = vmax.f32 %v2668_v17, %v4654_v30 }
 0x206   :  { %v1425_v4 = vsel %vm712_vm0, -inf, %v1242_v46  ;;  %v1615_v40 = vmax.f32 %v1552_v58, %v1487_v47  ;;  %v1490_v60 = vmax.f32 %v1106_v23, %v1426_v11  ;;  %v1108_v44 = vmax.f32 %v2663_v18, %v4653_v37  ;;  %v4656_v46 = vld [vmem:[#allocation23_spill] sm:$0xff]  ;;  %v1750_v30 = vld [vmem:[%s4377_s0 + $0xe0] sm:$0xff] }
 0x207   :  { %v1614_v6 = vmax.f32 %v1551_v51, %v1486_v31  ;;  %v1489_v39 = vmax.f32 %v1105_v62, %v1425_v4  ;;  %v4651_v31 = vld [vmem:[#allocation22_spill] sm:$0xff]  ;;  %v788_v23 = vmax.f32 %v403_v22, %v724_v33  ;;  %v787_v56 = vmax.f32 %v402_v63, %v723_v26  ;;  %v4655_v62 = vld [vmem:[#allocation81_spill] sm:$0xff]  ;;  %v1749_v33 = vld [vmem:[%s4377_s0 + $0xf0] sm:$0xff] }
 0x208   :  { %v405_v5 = vmax.f32 %v1747_v43, %v4651_v31  ;;  %1673 = vst.msk [vmem:[%s4378_s1 + $0x38] sm:$0xff] %vm1665_vm1, %v1615_v40  ;;  %v1554_v41 = vmax.f32 %v786_v35, %v1490_v60  ;;  %v1248_v47 = vpop.permute.xlu1 %1247  ;;  %v725_v58 = vsel %vm712_vm0, -inf, %v4655_v62  ;;  %v407_v26 = vmax.f32 %v1749_v33, %v4657_v36  ;;  %v4658_v4 = vld [vmem:[#allocation82_spill] sm:$0xff]  ;;  %v4659_v40 = vld [vmem:[#allocation152_spill] sm:$0xff]  ;;  %v4661_v31 = vld [vmem:[#allocation83_spill] sm:$0xff] }
 0x209   :  { %1672 = vst.msk [vmem:[%s4378_s1 + $0x30] sm:$0xff] %vm1665_vm1, %v1614_v6  ;;  %v1553_v8 = vmax.f32 %v785_v38, %v1489_v39  ;;  %v1246_v49 = vpop.permute.xlu0 %1245  ;;  %v1428_v18 = vsel %vm712_vm0, -inf, %v1248_v47  ;;  %v1748_v38 = vld [vmem:[%s4377_s0 + $0xc0] sm:$0xff]  ;;  %v728_v6 = vsel %vm712_vm0, -inf, %v4658_v4  ;;  %v1109_v42 = vmax.f32 %v2686_v34, %v4660_v32  ;;  %v4666_v62 = vld [vmem:[#allocation155_spill] sm:$0xff]  ;;  %v4667_v33 = vld [vmem:[#allocation85_spill] sm:$0xff] }
 0x20a   :  { %v1427_v17 = vsel %vm712_vm0, -inf, %v1246_v49  ;;  %v1616_v51 = vmax.f32 %v1554_v41, %v1489_v39  ;;  %v1492_v61 = vmax.f32 %v1108_v44, %v1428_v18  ;;  %v404_v25 = vmax.f32 %v1748_v38, %v4656_v46  ;;  %v4663_v47 = vld [vmem:[#allocation26_spill] sm:$0xff] }
 0x20b   :  { %1674 = vst.msk [vmem:[%s4378_s1 + $0x40] sm:$0xff] %vm1665_vm1, %v1553_v8  ;;  %v1491_v35 = vmax.f32 %v1107_v28, %v1427_v17  ;;  %v790_v11 = vmax.f32 %v405_v5, %v726_v3  ;;  %v1110_v39 = vmax.f32 %v2681_v29, %v4659_v40  ;;  %v727_v5 = vsel %vm712_vm0, -inf, %v4661_v31  ;;  %v4662_v28 = vld [vmem:[#allocation25_spill] sm:$0xff]  ;;  %v1751_v8 = vld [vmem:[%s4377_s0 + $0x110] sm:$0xff] }
 0x20c   :  { %1675 = vst.msk [vmem:[%s4378_s1 + $0x48] sm:$0xff] %vm1665_vm1, %v1616_v51  ;;  %v1556_v22 = vmax.f32 %v788_v23, %v1492_v61  ;;  %v1252_v2 = vpop.permute.xlu1 %1251  ;;  %v789_v43 = vmax.f32 %v404_v25, %v725_v58  ;;  %v406_v41 = vmax.f32 %v1750_v30, %v4662_v28  ;;  %v409_v49 = vmax.f32 %v1751_v8, %v4663_v47  ;;  %v4671_v31 = vld [vmem:[#allocation156_spill] sm:$0xff] }
 0x20d   :  { %v1555_v1 = vmax.f32 %v787_v56, %v1491_v35  ;;  %v1250_v63 = vpop.permute.xlu0 %1249  ;;  %v1430_v55 = vsel %vm712_vm0, -inf, %v1252_v2  ;;  %v792_v23 = vmax.f32 %v407_v26, %v728_v6  ;;  %v4664_v56 = vld [vmem:[#allocation84_spill] sm:$0xff]  ;;  %v1111_v58 = vmax.f32 %v2704_v21, %v4666_v62  ;;  %v1754_v2 = vld [vmem:[%s4377_s0 + $0x120] sm:$0xff]  ;;  %v4675_v62 = vld [vmem:[#allocation87_spill] sm:$0xff] }
 0x20e   :  { %v1429_v29 = vsel %vm712_vm0, -inf, %v1250_v63  ;;  %v1618_v37 = vmax.f32 %v1556_v22, %v1491_v35  ;;  %v1494_v34 = vmax.f32 %v1110_v39, %v1430_v55  ;;  %v730_v18 = vsel %vm712_vm0, -inf, %v4664_v56  ;;  %v1752_v39 = vld [vmem:[%s4377_s0 + $0x100] sm:$0xff]  ;;  %v4669_v22 = vld [vmem:[#allocation28_spill] sm:$0xff]  ;;  %v4672_v55 = vld [vmem:[#allocation157_spill] sm:$0xff] }
 0x20f   :  { %v1617_v3 = vmax.f32 %v1555_v1, %v1490_v60  ;;  %v1493_v44 = vmax.f32 %v1109_v42, %v1429_v29  ;;  %v4665_v60 = vld [vmem:[#allocation154_spill] sm:$0xff]  ;;  %v791_v25 = vmax.f32 %v406_v41, %v727_v5  ;;  %v1753_v42 = vld [vmem:[%s4377_s0 + $0x130] sm:$0xff]  ;;  %v1114_v5 = vmax.f32 %v2717_v19, %v4671_v31 }
 0x210   :  { %v1112_v17 = vmax.f32 %v2699_v24, %v4665_v60  ;;  %1677 = vst.msk [vmem:[%s4378_s1 + $0x58] sm:$0xff] %vm1665_vm1, %v1618_v37  ;;  %v1558_v51 = vmax.f32 %v790_v11, %v1494_v34  ;;  %v1256_v38 = vpop.permute.xlu1 %1255  ;;  %v729_v24 = vsel %vm712_vm0, -inf, %v4667_v33  ;;  %v4668_v11 = vld [vmem:[#allocation27_spill] sm:$0xff]  ;;  %v411_v1 = vmax.f32 %v1753_v42, %v4669_v22  ;;  %v4673_v41 = vld [vmem:[#allocation86_spill] sm:$0xff]  ;;  %v1755_v60 = vld [vmem:[%s4377_s0 + $0x150] sm:$0xff] }
 0x211   :  { %1676 = vst.msk [vmem:[%s4378_s1 + $0x50] sm:$0xff] %vm1665_vm1, %v1617_v3  ;;  %v1557_v35 = vmax.f32 %v789_v43, %v1493_v44  ;;  %v1254_v46 = vpop.permute.xlu0 %1253  ;;  %v1432_v21 = vsel %vm712_vm0, -inf, %v1256_v38  ;;  %v408_v32 = vmax.f32 %v1752_v39, %v4668_v11  ;;  %v794_v43 = vmax.f32 %v409_v49, %v730_v18  ;;  %v4677_v38 = vld [vmem:[#allocation89_spill] sm:$0xff]  ;;  %v4679_v33 = vld [vmem:[#allocation159_spill] sm:$0xff] }
 0x212   :  { %v1431_v36 = vsel %vm712_vm0, -inf, %v1254_v46  ;;  %v1620_v4 = vmax.f32 %v1558_v51, %v1493_v44  ;;  %v1496_v6 = vmax.f32 %v1112_v17, %v1432_v21  ;;  %v1113_v29 = vmax.f32 %v2722_v16, %v4672_v55  ;;  %v4676_v51 = vld [vmem:[#allocation88_spill] sm:$0xff] }
 0x213   :  { %v1619_v26 = vmax.f32 %v1557_v35, %v1492_v61  ;;  %v1495_v40 = vmax.f32 %v1111_v58, %v1431_v36  ;;  %v4670_v61 = vld [vmem:[#allocation29_spill] sm:$0xff]  ;;  %v793_v28 = vmax.f32 %v408_v32, %v729_v24  ;;  %v732_v19 = vsel %vm712_vm0, -inf, %v4673_v41 }
 0x214   :  { %v410_v63 = vmax.f32 %v1754_v2, %v4670_v61  ;;  %1679 = vst.msk [vmem:[%s4378_s1 + $0x68] sm:$0xff] %vm1665_vm1, %v1620_v4  ;;  %v1560_v3 = vmax.f32 %v792_v23, %v1496_v6  ;;  %v1260_v44 = vpop.permute.xlu1 %1259  ;;  %v4674_v23 = vld [vmem:[#allocation30_spill] sm:$0xff]  ;;  %v731_v58 = vsel %vm712_vm0, -inf, %v4675_v62  ;;  %v734_v35 = vsel %vm712_vm0, -inf, %v4676_v51  ;;  %v4680_v6 = vld [vmem:[#allocation31_spill] sm:$0xff]  ;;  %v1757_v61 = vld [vmem:[%s4377_s0 + $0x170] sm:$0xff] }
 0x215   :  { %1678 = vst.msk [vmem:[%s4378_s1 + $0x60] sm:$0xff] %vm1665_vm1, %v1619_v26  ;;  %v1559_v37 = vmax.f32 %v791_v25, %v1495_v40  ;;  %v1258_v30 = vpop.permute.xlu0 %1257  ;;  %v1434_v16 = vsel %vm712_vm0, -inf, %v1260_v44  ;;  %v413_v17 = vmax.f32 %v1755_v60, %v4674_v23  ;;  %v733_v46 = vsel %vm712_vm0, -inf, %v4677_v38  ;;  %v4678_v25 = vld [vmem:[#allocation158_spill] sm:$0xff]  ;;  %v4686_v60 = vld [vmem:[#allocation91_spill] sm:$0xff] }
 0x216   :  { %v1433_v8 = vsel %vm712_vm0, -inf, %v1258_v30  ;;  %v1622_v49 = vmax.f32 %v1560_v3, %v1495_v40  ;;  %v1498_v56 = vmax.f32 %v1114_v5, %v1434_v16  ;;  %v1115_v24 = vmax.f32 %v2740_v12, %v4679_v33  ;;  %v4682_v5 = vld [vmem:[#allocation33_spill] sm:$0xff]  ;;  %v1760_v30 = vld [vmem:[%s4377_s0 + $0x148] sm:$0xff]  ;;  %v1762_v33 = vld [vmem:[%s4377_s0 + $0x180] sm:$0xff] }
 0x217   :  { %v1621_v47 = vmax.f32 %v1559_v37, %v1494_v34  ;;  %v1497_v18 = vmax.f32 %v1113_v29, %v1433_v8  ;;  %v1116_v34 = vmax.f32 %v2735_v13, %v4678_v25  ;;  %v1756_v13 = vld [vmem:[%s4377_s0 + $0x140] sm:$0xff]  ;;  %v796_v40 = vmax.f32 %v411_v1, %v732_v19  ;;  %v1759_v3 = vld [vmem:[%s4377_s0 + $0x158] sm:$0xff]  ;;  %v4683_v37 = vld [vmem:[#allocation160_spill] sm:$0xff] }
 0x218   :  { %1681 = vst.msk [vmem:[%s4378_s1 + $0x78] sm:$0xff] %vm1665_vm1, %v1622_v49  ;;  %v1562_v21 = vmax.f32 %v794_v43, %v1498_v56  ;;  %v1264_v26 = vpop.permute.xlu1 %1263  ;;  %v412_v12 = vmax.f32 %v1756_v13, %v4680_v6  ;;  %v795_v32 = vmax.f32 %v410_v63, %v731_v58  ;;  %v4681_v43 = vld [vmem:[#allocation32_spill] sm:$0xff]  ;;  %v1758_v1 = vld [vmem:[%s4377_s0 + $0x160] sm:$0xff]  ;;  %v798_v55 = vmax.f32 %v413_v17, %v734_v35  ;;  %v1763_v13 = vld [vmem:[%s4377_s0 + $0x178] sm:$0xff] }
 0x219   :  { %1680 = vst.msk [vmem:[%s4378_s1 + $0x70] sm:$0xff] %vm1665_vm1, %v1621_v47  ;;  %v1561_v36 = vmax.f32 %v793_v28, %v1497_v18  ;;  %v1262_v4 = vpop.permute.xlu0 %1261  ;;  %v1436_v39 = vsel %vm712_vm0, -inf, %v1264_v26  ;;  %v415_v31 = vmax.f32 %v1757_v61, %v4681_v43  ;;  %v414_v63 = vmax.f32 %v1758_v1, %v4682_v5  ;;  %v4684_v28 = vld [vmem:[#allocation161_spill] sm:$0xff]  ;;  %v4685_v49 = vld [vmem:[#allocation90_spill] sm:$0xff] }
 0x21a   :  { %v1435_v11 = vsel %vm712_vm0, -inf, %v1262_v4  ;;  %v1623_v42 = vmax.f32 %v1562_v21, %v1497_v18  ;;  %v1500_v22 = vmax.f32 %v1116_v34, %v1436_v39  ;;  %v797_v29 = vmax.f32 %v412_v12, %v733_v46  ;;  %v1761_v46 = vld [vmem:[%s4377_s0 + $0x190] sm:$0xff]  ;;  %v4687_v25 = vld [vmem:[#allocation34_spill] sm:$0xff]  ;;  %v4690_v4 = vld [vmem:[#allocation93_spill] sm:$0xff] }
 0x21b   :  { %1682 = vst.msk [vmem:[%s4378_s1 + $0x80] sm:$0xff] %vm1665_vm1, %v1561_v36  ;;  %v1499_v2 = vmax.f32 %v1115_v24, %v1435_v11  ;;  %v1118_v44 = vmax.f32 %v1759_v3, %v4683_v37  ;;  %v1117_v41 = vmax.f32 %v1760_v30, %v4684_v28  ;;  %v736_v18 = vsel %vm712_vm0, -inf, %v4685_v49  ;;  %v4688_v24 = vld [vmem:[#allocation35_spill] sm:$0xff]  ;;  %v4689_v36 = vld [vmem:[#allocation92_spill] sm:$0xff]  ;;  %v4691_v6 = vld [vmem:[#allocation162_spill] sm:$0xff] }
 0x21c   :  { %1683 = vst.msk [vmem:[%s4378_s1 + $0x88] sm:$0xff] %vm1665_vm1, %v1623_v42  ;;  %v1564_v19 = vmax.f32 %v796_v40, %v1500_v22  ;;  %v1268_v8 = vpop.permute.xlu1 %1267  ;;  %v735_v23 = vsel %vm712_vm0, -inf, %v4686_v60  ;;  %v417_v34 = vmax.f32 %v1761_v46, %v4687_v25  ;;  %v416_v21 = vmax.f32 %v1762_v33, %v4688_v24  ;;  %v1764_v40 = vld [vmem:[%s4377_s0 + $0x168] sm:$0xff]  ;;  %v4694_v49 = vld [vmem:[#allocation94_spill] sm:$0xff]  ;;  %v1767_v25 = vld [vmem:[%s4377_s0 + $0x1b0] sm:$0xff] }
 0x21d   :  { %v1563_v16 = vmax.f32 %v795_v32, %v1499_v2  ;;  %v1266_v47 = vpop.permute.xlu0 %1265  ;;  %v1438_v17 = vsel %vm712_vm0, -inf, %v1268_v8  ;;  %v738_v26 = vsel %vm712_vm0, -inf, %v4689_v36  ;;  %v1120_v12 = vmax.f32 %v1763_v13, %v4691_v6  ;;  %v4692_v39 = vld [vmem:[#allocation163_spill] sm:$0xff]  ;;  %v1768_v24 = vld [vmem:[%s4377_s0 + $0x1a0] sm:$0xff]  ;;  %v1770_v6 = vld [vmem:[%s4377_s0 + $0x1b8] sm:$0xff] }
 0x21e   :  { %v1437_v62 = vsel %vm712_vm0, -inf, %v1266_v47  ;;  %v1625_v51 = vmax.f32 %v1564_v19, %v1499_v2  ;;  %v1502_v35 = vmax.f32 %v1118_v44, %v1438_v17  ;;  %v1119_v11 = vmax.f32 %v1764_v40, %v4692_v39  ;;  %v4695_v60 = vld [vmem:[#allocation95_spill] sm:$0xff] }
 0x21f   :  { %v1624_v58 = vmax.f32 %v1563_v16, %v1498_v56  ;;  %v1501_v38 = vmax.f32 %v1117_v41, %v1437_v62  ;;  %v737_v56 = vsel %vm712_vm0, -inf, %v4690_v4  ;;  %v800_v43 = vmax.f32 %v415_v31, %v736_v18  ;;  %v1765_v16 = vld [vmem:[%s4377_s0 + $0x198] sm:$0xff]  ;;  %v1766_v31 = vld [vmem:[%s4377_s0 + $0x188] sm:$0xff] }
 0x220   :  { %1685 = vst.msk [vmem:[%s4378_s1 + $0x98] sm:$0xff] %vm1665_vm1, %v1625_v51  ;;  %v1566_v32 = vmax.f32 %v798_v55, %v1502_v35  ;;  %v1272_v2 = vpop.permute.xlu1 %1271  ;;  %v799_v1 = vmax.f32 %v414_v63, %v735_v23  ;;  %v802_v41 = vmax.f32 %v417_v34, %v738_v26  ;;  %v801_v19 = vmax.f32 %v416_v21, %v737_v56  ;;  %v4693_v63 = vld [vmem:[#allocation164_spill] sm:$0xff]  ;;  %v4697_v21 = vld [vmem:[#allocation37_spill] sm:$0xff]  ;;  %v1771_v40 = vld [vmem:[%s4377_s0 + $0x1a8] sm:$0xff] }
 0x221   :  { %1684 = vst.msk [vmem:[%s4378_s1 + $0x90] sm:$0xff] %vm1665_vm1, %v1624_v58  ;;  %v1565_v42 = vmax.f32 %v797_v29, %v1501_v38  ;;  %v1270_v61 = vpop.permute.xlu0 %1269  ;;  %v1440_v5 = vsel %vm712_vm0, -inf, %v1272_v2  ;;  %v1122_v55 = vmax.f32 %v1765_v16, %v3220_v57  ;;  %v1121_v29 = vmax.f32 %v1766_v31, %v4693_v63  ;;  %v4696_v34 = vld [vmem:[#allocation36_spill] sm:$0xff]  ;;  %v4703_v63 = vld [vmem:[#allocation98_spill] sm:$0xff] }
 0x222   :  { %v1439_v3 = vsel %vm712_vm0, -inf, %v1270_v61  ;;  %v1627_v44 = vmax.f32 %v1566_v32, %v1501_v38  ;;  %v1504_v30 = vmax.f32 %v1120_v12, %v1440_v5  ;;  %v740_v18 = vsel %vm712_vm0, -inf, %v4694_v49  ;;  %v1769_v26 = vld [vmem:[%s4377_s0 + $0x1d0] sm:$0xff] }
 0x223   :  { %v1626_v37 = vmax.f32 %v1565_v42, %v1500_v22  ;;  %v1503_v28 = vmax.f32 %v1119_v11, %v1439_v3  ;;  %v739_v23 = vsel %vm712_vm0, -inf, %v4695_v60  ;;  %v419_v33 = vmax.f32 %v1767_v25, %v4696_v34  ;;  %v4699_v56 = vld [vmem:[#allocation96_spill] sm:$0xff] }
 0x224   :  { %1687 = vst.msk [vmem:[%s4378_s1 + $0xa8] sm:$0xff] %vm1665_vm1, %v1627_v44  ;;  %v1568_v22 = vmax.f32 %v800_v43, %v1504_v30  ;;  %v1276_v47 = vpop.permute.xlu1 %1275  ;;  %v418_v36 = vmax.f32 %v1768_v24, %v4697_v21  ;;  %v742_v13 = vsel %vm712_vm0, -inf, %v4699_v56  ;;  %v1124_v12 = vmax.f32 %v1770_v6, %v3228_v48  ;;  %v1772_v30 = vld [vmem:[%s4377_s0 + $0x1c0] sm:$0xff]  ;;  %v4702_v16 = vld [vmem:[#allocation40_spill] sm:$0xff]  ;;  %v4705_v24 = vld [vmem:[#allocation41_spill] sm:$0xff] }
 0x225   :  { %1686 = vst.msk [vmem:[%s4378_s1 + $0xa0] sm:$0xff] %vm1665_vm1, %v1626_v37  ;;  %v1567_v8 = vmax.f32 %v799_v1, %v1503_v28  ;;  %v1274_v57 = vpop.permute.xlu0 %1273  ;;  %v1442_v17 = vsel %vm712_vm0, -inf, %v1276_v47  ;;  %v1123_v39 = vmax.f32 %v1771_v40, %v3230_v50  ;;  %v804_v2 = vmax.f32 %v419_v33, %v740_v18  ;;  %v4700_v1 = vld [vmem:[#allocation97_spill] sm:$0xff]  ;;  %v1775_v47 = vld [vmem:[%s4377_s0 + $0x1c8] sm:$0xff]  ;;  %v1776_v33 = vld [vmem:[%s4377_s0 + $0x1e0] sm:$0xff] }
 0x226   :  { %v1441_v62 = vsel %vm712_vm0, -inf, %v1274_v57  ;;  %v1629_v51 = vmax.f32 %v1568_v22, %v1503_v28  ;;  %v1506_v38 = vmax.f32 %v1122_v55, %v1442_v17  ;;  %v803_v61 = vmax.f32 %v418_v36, %v739_v23  ;;  %v4701_v28 = vld [vmem:[#allocation39_spill] sm:$0xff]  ;;  %v1774_v22 = vld [vmem:[%s4377_s0 + $0x1d8] sm:$0xff] }
 0x227   :  { %v1628_v58 = vmax.f32 %v1567_v8, %v1502_v35  ;;  %v1505_v46 = vmax.f32 %v1121_v29, %v1441_v62  ;;  %v4698_v35 = vld [vmem:[#allocation38_spill] sm:$0xff]  ;;  %v741_v5 = vsel %vm712_vm0, -inf, %v4700_v1  ;;  %v744_v29 = vsel %vm712_vm0, -inf, %v4703_v63  ;;  %v4704_v62 = vld [vmem:[#allocation99_spill] sm:$0xff]  ;;  %v4710_v63 = vld [vmem:[#allocation105_spill] sm:$0xff] }
 0x228   :  { %v421_v4 = vmax.f32 %v1769_v26, %v4698_v35  ;;  %1689 = vst.msk [vmem:[%s4378_s1 + $0xb8] sm:$0xff] %vm1665_vm1, %v1629_v51  ;;  %v1570_v11 = vmax.f32 %v802_v41, %v1506_v38  ;;  %v1280_v42 = vpop.permute.xlu1 %1279  ;;  %v420_v41 = vmax.f32 %v1772_v30, %v4701_v28  ;;  %v1126_v8 = vmax.f32 %v1774_v22, %v3236_v59  ;;  %v1777_v26 = vld [vmem:[%s4377_s0 + $0x1f8] sm:$0xff]  ;;  %v4706_v40 = vld [vmem:[#allocation103_spill] sm:$0xff]  ;;  %v1780_v1 = vld [vmem:[%s4377_s0 + $0x220] sm:$0xff] }
 0x229   :  { %1688 = vst.msk [vmem:[%s4378_s1 + $0xb0] sm:$0xff] %vm1665_vm1, %v1628_v58  ;;  %v1569_v32 = vmax.f32 %v801_v19, %v1505_v46  ;;  %v1278_v48 = vpop.permute.xlu0 %1277  ;;  %v1444_v43 = vsel %vm712_vm0, -inf, %v1280_v42  ;;  %v1773_v19 = vld [vmem:[%s4377_s0 + $0x1f0] sm:$0xff]  ;;  %v1125_v57 = vmax.f32 %v1775_v47, %v3238_v9  ;;  %v743_v58 = vsel %vm712_vm0, -inf, %v4704_v62 }
 0x22a   :  { %v1443_v50 = vsel %vm712_vm0, -inf, %v1278_v48  ;;  %v1630_v3 = vmax.f32 %v1570_v11, %v1505_v46  ;;  %v1508_v37 = vmax.f32 %v1124_v12, %v1444_v43  ;;  %v423_v55 = vmax.f32 %v1773_v19, %v4702_v16  ;;  %v4707_v43 = vld [vmem:[#allocation44_spill] sm:$0xff] }
 0x22b   :  { %1690 = vst.msk [vmem:[%s4378_s1 + $0xc0] sm:$0xff] %vm1665_vm1, %v1569_v32  ;;  %v1507_v44 = vmax.f32 %v1123_v39, %v1443_v50  ;;  %v806_v31 = vmax.f32 %v421_v4, %v742_v13  ;;  %v805_v17 = vmax.f32 %v420_v41, %v741_v5  ;;  %v422_v21 = vmax.f32 %v1776_v33, %v4705_v24  ;;  %v4708_v5 = vld [vmem:[#allocation45_spill] sm:$0xff] }
 0x22c   :  { %1691 = vst.msk [vmem:[%s4378_s1 + $0xc8] sm:$0xff] %vm1665_vm1, %v1630_v3  ;;  %v1572_v49 = vmax.f32 %v804_v2, %v1508_v37  ;;  %v1284_v60 = vpop.permute.xlu1 %1283  ;;  %v808_v36 = vmax.f32 %v423_v55, %v744_v29  ;;  %v1128_v35 = vmax.f32 %v1777_v26, %v3244_v52  ;;  %v747_v39 = vsel %vm712_vm0, -inf, %v4706_v40 }
 0x22d   :  { %v1571_v18 = vmax.f32 %v803_v61, %v1507_v44  ;;  %v1282_v23 = vpop.permute.xlu0 %1281  ;;  %v1446_v59 = vsel %vm712_vm0, -inf, %v1284_v60  ;;  %v807_v12 = vmax.f32 %v422_v21, %v743_v58  ;;  %v1779_v61 = vld [vmem:[%s4377_s0 + $0x230] sm:$0xff]  ;;  %v426_v3 = vmax.f32 %v1780_v1, %v4708_v5  ;;  %v1783_v60 = vld [vmem:[%s4377_s0 + $0x240] sm:$0xff]  ;;  %v1784_v58 = vld [vmem:[%s4377_s0 + $0x238] sm:$0xff] }
 0x22e   :  { %v1445_v51 = vsel %vm712_vm0, -inf, %v1282_v23  ;;  %v1632_v25 = vmax.f32 %v1572_v49, %v1507_v44  ;;  %v1510_v9 = vmax.f32 %v1126_v8, %v1446_v59  ;;  %v427_v50 = vmax.f32 %v1779_v61, %v4707_v43  ;;  %v4709_v44 = vld [vmem:[#allocation102_spill] sm:$0xff]  ;;  %v1782_v8 = vld [vmem:[%s4377_s0 + $0x218] sm:$0xff]  ;;  %v4711_v23 = vld [vmem:[#allocation47_spill] sm:$0xff] }
 0x22f   :  { %v1631_v46 = vmax.f32 %v1571_v18, %v1506_v38  ;;  %v1509_v34 = vmax.f32 %v1125_v57, %v1445_v51  ;;  %v1778_v38 = vld [vmem:[%s4377_s0 + $0x1e8] sm:$0xff]  ;;  %v748_v30 = vsel %vm712_vm0, -inf, %v4709_v44  ;;  %v749_v29 = vsel %vm712_vm0, -inf, %v4710_v63 }
 0x230   :  { %v1127_v4 = vmax.f32 %v1778_v38, %v3246_v10  ;;  %1693 = vst.msk [vmem:[%s4378_s1 + $0xd8] sm:$0xff] %vm1665_vm1, %v1632_v25  ;;  %v1574_v56 = vmax.f32 %v806_v31, %v1510_v9  ;;  %v1288_v6 = vpop.permute.xlu1 %1287  ;;  %v811_v31 = vmax.f32 %v426_v3, %v747_v39  ;;  %v1130_v47 = vmax.f32 %v1782_v8, %v3252_v53  ;;  %v1785_v53 = vld [vmem:[%s4377_s0 + $0x248] sm:$0xff]  ;;  %v1788_v39 = vld [vmem:[%s4377_s0 + $0x258] sm:$0xff] }
 0x231   :  { %1692 = vst.msk [vmem:[%s4378_s1 + $0xd0] sm:$0xff] %vm1665_vm1, %v1631_v46  ;;  %v1573_v13 = vmax.f32 %v805_v17, %v1509_v34  ;;  %v1286_v52 = vpop.permute.xlu0 %1285  ;;  %v1448_v10 = vsel %vm712_vm0, -inf, %v1288_v6  ;;  %v428_v17 = vmax.f32 %v1783_v60, %v4711_v23  ;;  %v812_v62 = vmax.f32 %v427_v50, %v748_v30  ;;  %v1793_v60 = vld [vmem:[%s4377_s0 + $0x2a0] sm:$0xff]  ;;  %v4721_v23 = vld [vmem:[#allocation53_spill] sm:$0xff] }
 0x232   :  { %v1447_v11 = vsel %vm712_vm0, -inf, %v1286_v52  ;;  %v1634_v42 = vmax.f32 %v1574_v56, %v1509_v34  ;;  %v1512_v48 = vmax.f32 %v1128_v35, %v1448_v10  ;;  %v1132_v59 = vmax.f32 %v1784_v58, %v3260_v0  ;;  %v4712_v34 = vld [vmem:[#allocation104_spill] sm:$0xff]  ;;  %v1787_v52 = vld [vmem:[%s4377_s0 + $0x260] sm:$0xff] }
 0x233   :  { %v1633_v32 = vmax.f32 %v1573_v13, %v1508_v37  ;;  %v1511_v2 = vmax.f32 %v1127_v4, %v1447_v11  ;;  %v1781_v37 = vld [vmem:[%s4377_s0 + $0x228] sm:$0xff]  ;;  %v1133_v51 = vmax.f32 %v1785_v53, %v3270_v7  ;;  %v750_v33 = vsel %vm712_vm0, -inf, %v4712_v34  ;;  %v1786_v56 = vld [vmem:[%s4377_s0 + $0x250] sm:$0xff]  ;;  %v4714_v13 = vld [vmem:[#allocation46_spill] sm:$0xff] }
 0x234   :  { %v1131_v28 = vmax.f32 %v1781_v37, %v3262_v15  ;;  %1695 = vst.msk [vmem:[%s4378_s1 + $0xe8] sm:$0xff] %vm1665_vm1, %v1634_v42  ;;  %v1576_v41 = vmax.f32 %v808_v36, %v1512_v48  ;;  %v1294_v16 = vpop.permute.xlu1 %1293  ;;  %v813_v24 = vmax.f32 %v428_v17, %v749_v29  ;;  %v4713_v36 = vld [vmem:[#allocation108_spill] sm:$0xff]  ;;  %v429_v6 = vmax.f32 %v1786_v56, %v4714_v13  ;;  %v1789_v11 = vld [vmem:[%s4377_s0 + $0x268] sm:$0xff]  ;;  %v1791_v29 = vld [vmem:[%s4377_s0 + $0x278] sm:$0xff] }
 0x235   :  { %1694 = vst.msk [vmem:[%s4378_s1 + $0xe0] sm:$0xff] %vm1665_vm1, %v1633_v32  ;;  %v1575_v19 = vmax.f32 %v807_v12, %v1511_v2  ;;  %v1292_v55 = vpop.permute.xlu0 %1291  ;;  %v1451_v15 = vsel %vm712_vm0, -inf, %v1294_v16  ;;  %v751_v26 = vsel %vm712_vm0, -inf, %v4713_v36  ;;  %v4715_v12 = vld [vmem:[#allocation49_spill] sm:$0xff]  ;;  %v1134_v10 = vmax.f32 %v1788_v39, %v3268_v54  ;;  %v4716_v37 = vld [vmem:[#allocation48_spill] sm:$0xff]  ;;  %v4718_v16 = vld [vmem:[#allocation111_spill] sm:$0xff] }
 0x236   :  { %v1450_v22 = vsel %vm712_vm0, -inf, %v1292_v55  ;;  %v1636_v49 = vmax.f32 %v1576_v41, %v1511_v2  ;;  %v1515_v18 = vmax.f32 %v1131_v28, %v1451_v15  ;;  %v430_v40 = vmax.f32 %v1787_v52, %v4715_v12  ;;  %v4717_v41 = vld [vmem:[#allocation107_spill] sm:$0xff]  ;;  %v1795_v34 = vld [vmem:[%s4377_s0 + $0x2c0] sm:$0xff]  ;;  %v4724_v36 = vld [vmem:[#allocation113_spill] sm:$0xff] }
 0x237   :  { %v1635_v57 = vmax.f32 %v1575_v19, %v1510_v9  ;;  %v3866_v25 = vmax.f32 %v1130_v47, %v1450_v22  ;;  %v1135_v32 = vmax.f32 %v1789_v11, %v3278_v20  ;;  %v814_v43 = vmax.f32 %v429_v6, %v750_v33  ;;  %v1790_v20 = vld [vmem:[%s4377_s0 + $0x270] sm:$0xff]  ;;  %v4723_v33 = vld [vmem:[#allocation55_spill] sm:$0xff]  ;;  %v4726_v11 = vld [vmem:[#allocation166_spill] sm:$0xff] }
 0x238   :  { %1697 = vst.msk [vmem:[%s4378_s1 + $0xf8] sm:$0xff] %vm1665_vm1, %v1636_v49  ;;  %v1579_v46 = vmax.f32 %v811_v31, %v1515_v18  ;;  %v1298_v0 = vpop.permute.xlu1 %1297  ;;  %v815_v50 = vmax.f32 %v430_v40, %v751_v26  ;;  %v431_v28 = vmax.f32 %v1790_v20, %v4716_v37  ;;  %v752_v19 = vsel %vm712_vm0, -inf, %v4717_v41  ;;  %v4719_v31 = vld [vmem:[#allocation112_spill] sm:$0xff]  ;;  %v4730_v37 = vld [vmem:[#allocation169_spill] sm:$0xff] }
 0x239   :  { %1696 = vst.msk [vmem:[%s4378_s1 + $0xf0] sm:$0xff] %vm1665_vm1, %v1635_v57  ;;  %v1296_v9 = vpop.permute.xlu0 %1295  ;;  %v1453_v7 = vsel %vm712_vm0, -inf, %v1298_v0  ;;  %v756_v55 = vsel %vm712_vm0, -inf, %v4718_v16  ;;  %v755_v63 = vsel %vm712_vm0, -inf, %v4719_v31  ;;  %v1136_v15 = vmax.f32 %v1791_v29, %v3276_v45  ;;  %v1792_v49 = vld [vmem:[%s4377_s0 + $0x2b0] sm:$0xff]  ;;  %v4722_v0 = vld [vmem:[#allocation54_spill] sm:$0xff] }
 0x23a   :  { %v1452_v21 = vsel %vm712_vm0, -inf, %v1296_v9  ;;  %v1638_v35 = vmax.f32 %v1579_v46, %v3866_v25  ;;  %v1517_v38 = vmax.f32 %v1133_v51, %v1453_v7  ;;  %v434_v17 = vmax.f32 %v1793_v60, %v4721_v23  ;;  %v1794_v46 = vld [vmem:[%s4377_s0 + $0x2d0] sm:$0xff]  ;;  %v4731_v29 = vld [vmem:[#allocation117_spill] sm:$0xff]  ;;  %v4732_v60 = vld [vmem:[#allocation42_spill] sm:$0xff] }
 0x23b   :  { %v1516_v4 = vmax.f32 %v1132_v59, %v1452_v21  ;;  %v816_v58 = vmax.f32 %v431_v28, %v752_v19  ;;  %v437_v9 = vmax.f32 %v1794_v46, %v4722_v0  ;;  %v758_v26 = vsel %vm712_vm0, -inf, %v4724_v36  ;;  %v1805_v0 = vld [vmem:[%s4377_s0 + $0x2f8] sm:$0xff] }
 0x23c   :  { %1700 = vst.msk [vmem:[%s4378_s1 + $0x110] sm:$0xff] %vm1665_vm1, %v1638_v35  ;;  %v1581_v42 = vmax.f32 %v813_v24, %v1517_v38  ;;  %v1302_v2 = vpop.permute.xlu1 %1301  ;;  %v436_v24 = vmax.f32 %v1795_v34, %v4723_v33  ;;  %v819_v21 = vmax.f32 %v434_v17, %v755_v63  ;;  %v1796_v35 = vld [vmem:[%s4377_s0 + $0x2b8] sm:$0xff]  ;;  %v3998_v17 = vld [vmem:[%s4377_s0 + $0x200] sm:$0xff]  ;;  %v1806_v33 = vld [vmem:[%s4377_s0 + $0x2e8] sm:$0xff] }
 0x23d   :  { %v1580_v48 = vmax.f32 %v812_v62, %v1516_v4  ;;  %v1300_v61 = vpop.permute.xlu0 %1299  ;;  %v1455_v1 = vsel %vm712_vm0, -inf, %v1302_v2 }
 0x23e   :  { %v1454_v54 = vsel %vm712_vm0, -inf, %v1300_v61  ;;  %v1640_v3 = vmax.f32 %v1581_v42, %v1516_v4  ;;  %v1519_v44 = vmax.f32 %v1135_v32, %v1455_v1  ;;  %v1797_v4 = vld [vmem:[%s4377_s0 + $0x2a8] sm:$0xff]  ;;  %v1799_v61 = vld [vmem:[%s4377_s0 + $0x2f0] sm:$0xff]  ;;  %v822_v1 = vmax.f32 %v437_v9, %v758_v26  ;;  %v4735_v9 = vld [vmem:[#allocation170_spill] sm:$0xff] }
 0x23f   :  { %v1639_v5 = vmax.f32 %v1580_v48, %v1515_v18  ;;  %v1518_v30 = vmax.f32 %v1134_v10, %v1454_v54  ;;  %v4720_v18 = vld [vmem:[#allocation52_spill] sm:$0xff]  ;;  %v1139_v56 = vmax.f32 %v1797_v4, %v3294_v27  ;;  %v1798_v10 = vld [vmem:[%s4377_s0 + $0x298] sm:$0xff]  ;;  %v1144_v34 = vmax.f32 %v1805_v0, %v4735_v9  ;;  %v4747_v0 = vld [vmem:[#allocation62_spill] sm:$0xff] }
 0x240   :  { %1702 = vst.msk [vmem:[%s4378_s1 + $0x120] sm:$0xff] %vm1665_vm1, %v1640_v3  ;;  %v1583_v22 = vmax.f32 %v815_v50, %v1519_v44  ;;  %v1308_v47 = vpop.permute.xlu1 %1307  ;;  %v435_v45 = vmax.f32 %v1792_v49, %v4720_v18  ;;  %v1138_v32 = vmax.f32 %v1798_v10, %v4726_v11  ;;  %v4728_v54 = vld [vmem:[#allocation116_spill] sm:$0xff]  ;;  %v1800_v3 = vld [vmem:[%s4377_s0 + $0x2d8] sm:$0xff]  ;;  %v4036_v11 = vld [vmem:[%s4377_s0 + $0x280] sm:$0xff] }
 0x241   :  { %1701 = vst.msk [vmem:[%s4378_s1 + $0x118] sm:$0xff] %vm1665_vm1, %v1639_v5  ;;  %v1582_v8 = vmax.f32 %v814_v43, %v1518_v30  ;;  %v1304_v57 = vpop.permute.xlu0 %1303  ;;  %v1458_v40 = vsel %vm712_vm0, -inf, %v1308_v47  ;;  %v4727_v43 = vld [vmem:[#allocation56_spill] sm:$0xff]  ;;  %v760_v5 = vsel %vm712_vm0, -inf, %v4728_v54  ;;  %v4737_v4 = vld [vmem:[#allocation121_spill] sm:$0xff] }
 0x242   :  { %v1456_v62 = vsel %vm712_vm0, -inf, %v1304_v57  ;;  %v1642_v53 = vmax.f32 %v1583_v22, %v1518_v30  ;;  %v820_v7 = vmax.f32 %v435_v45, %v756_v55  ;;  %v439_v50 = vmax.f32 %v1799_v61, %v4727_v43  ;;  %v4729_v30 = vld [vmem:[#allocation168_spill] sm:$0xff]  ;;  %v1810_v43 = vld [vmem:[%s4377_s0 + $0x320] sm:$0xff] }
 0x243   :  { %v1641_v59 = vmax.f32 %v1582_v8, %v1517_v38  ;;  %v1520_v51 = vmax.f32 %v1136_v15, %v1456_v62  ;;  %v1140_v38 = vmax.f32 %v1796_v35, %v3292_v14  ;;  %v4725_v14 = vld [vmem:[#allocation114_spill] sm:$0xff]  ;;  %v1142_v20 = vmax.f32 %v1800_v3, %v4729_v30  ;;  %v3991_v45 = vld [vmem:[%s4377_s0 + $0x210] sm:$0xff]  ;;  %v4733_v62 = vld [vmem:[#allocation43_spill] sm:$0xff] }
 0x244   :  { %1704 = vst.msk [vmem:[%s4378_s1 + $0x130] sm:$0xff] %vm1665_vm1, %v1642_v53  ;;  %v1312_v6 = vpop.permute.xlu1 %1311  ;;  %v757_v12 = vsel %vm712_vm0, -inf, %v4725_v14  ;;  %v3977_v41 = vmax.f32 %v1138_v32, %v1458_v40  ;;  %v759_v15 = vsel %vm712_vm0, -inf, %v4731_v29  ;;  %v425_v23 = vmax.f32 %v3991_v45, %v4732_v60  ;;  %v4734_v53 = vld [vmem:[#allocation57_spill] sm:$0xff]  ;;  %v4739_v32 = vld [vmem:[#allocation51_spill] sm:$0xff]  ;;  %v4742_v54 = vld [vmem:[#allocation120_spill] sm:$0xff] }
 0x245   :  { %1703 = vst.msk [vmem:[%s4378_s1 + $0x128] sm:$0xff] %vm1665_vm1, %v1641_v59  ;;  %v1584_v13 = vmax.f32 %v816_v58, %v1520_v51  ;;  %v1310_v52 = vpop.permute.xlu0 %1309  ;;  %v1460_v27 = vsel %vm712_vm0, -inf, %v1312_v6  ;;  %v821_v63 = vmax.f32 %v436_v24, %v757_v12  ;;  %v424_v58 = vmax.f32 %v3998_v17, %v4733_v62  ;;  %v1804_v59 = vld [vmem:[%s4377_s0 + $0x2e0] sm:$0xff]  ;;  %v4736_v24 = vld [vmem:[#allocation171_spill] sm:$0xff]  ;;  %v4783_v60 = vld [vmem:[#allocation140_spill] sm:$0xff] }
 0x246   :  { %v1459_v39 = vsel %vm712_vm0, -inf, %v1310_v52  ;;  %v1524_v48 = vmax.f32 %v1140_v38, %v1460_v27  ;;  %v438_v51 = vmax.f32 %v1804_v59, %v4734_v53  ;;  %v824_v46 = vmax.f32 %v439_v50, %v760_v5  ;;  %v4029_v27 = vld [vmem:[%s4377_s0 + $0x290] sm:$0xff]  ;;  %v4741_v50 = vld [vmem:[#allocation61_spill] sm:$0xff]  ;;  %v1811_v3 = vld [vmem:[%s4377_s0 + $0x328] sm:$0xff] }
 0x247   :  { %v1643_v42 = vmax.f32 %v1584_v13, %v1519_v44  ;;  %v1523_v2 = vmax.f32 %v1139_v56, %v1459_v39  ;;  %v1801_v44 = vld [vmem:[%s4377_s0 + $0x2c8] sm:$0xff]  ;;  %v763_v56 = vsel %vm712_vm0, -inf, %v4737_v4  ;;  %v4738_v39 = vld [vmem:[#allocation50_spill] sm:$0xff]  ;;  %v764_v5 = vsel %vm712_vm0, -inf, %v4742_v54  ;;  %v1813_v59 = vld [vmem:[%s4377_s0 + $0x330] sm:$0xff] }
 0x248   :  { %v1141_v28 = vmax.f32 %v1801_v44, %v4730_v37  ;;  %v1588_v19 = vmax.f32 %v820_v7, %v1524_v48  ;;  %v1316_v55 = vpop.permute.xlu1 %1315  ;;  %v1143_v7 = vmax.f32 %v1806_v33, %v4736_v24  ;;  %v823_v38 = vmax.f32 %v438_v51, %v759_v15  ;;  %v4743_v30 = vld [vmem:[#allocation175_spill] sm:$0xff]  ;;  %v1812_v15 = vld [vmem:[%s4377_s0 + $0x318] sm:$0xff]  ;;  %v4746_v53 = vld [vmem:[#allocation60_spill] sm:$0xff] }
 0x249   :  { %1705 = vst.msk [vmem:[%s4378_s1 + $0x138] sm:$0xff] %vm1665_vm1, %v1643_v42  ;;  %v1587_v16 = vmax.f32 %v819_v21, %v1523_v2  ;;  %v1314_v31 = vpop.permute.xlu0 %1313  ;;  %v1462_v22 = vsel %vm712_vm0, -inf, %v1316_v55  ;;  %v433_v10 = vmax.f32 %v4029_v27, %v4738_v39  ;;  %v432_v42 = vmax.f32 %v4036_v11, %v4739_v32  ;;  %v4744_v55 = vld [vmem:[#allocation123_spill] sm:$0xff]  ;;  %v4749_v24 = vld [vmem:[#allocation122_spill] sm:$0xff] }
 0x24a   :  { %v1461_v8 = vsel %vm712_vm0, -inf, %v1314_v31  ;;  %v1646_v57 = vmax.f32 %v1588_v19, %v1523_v2  ;;  %v1526_v49 = vmax.f32 %v1142_v20, %v1462_v22  ;;  %v4740_v2 = vld [vmem:[#allocation58_spill] sm:$0xff]  ;;  %v1147_v20 = vmax.f32 %v1811_v3, %v4743_v30  ;;  %v4745_v22 = vld [vmem:[#allocation172_spill] sm:$0xff]  ;;  %v4748_v33 = vld [vmem:[#allocation63_spill] sm:$0xff] }
 0x24b   :  { %v1645_v47 = vmax.f32 %v1587_v16, %v3977_v41  ;;  %v1525_v18 = vmax.f32 %v1141_v28, %v1461_v8  ;;  %v765_v31 = vsel %vm712_vm0, -inf, %v4744_v55  ;;  %v1146_v8 = vmax.f32 %v1812_v15, %v4745_v22  ;;  %v4755_v55 = vld [vmem:[#allocation66_spill] sm:$0xff]  ;;  %v4756_v15 = vld [vmem:[#allocation176_spill] sm:$0xff]  ;;  %v1837_v45 = vld [vmem:[%s4377_s0 + $0x3e8] sm:$0xff] }
 0x24c   :  { %1709 = vst.msk [vmem:[%s4378_s1 + $0x158] sm:$0xff] %vm1665_vm1, %v1646_v57  ;;  %v1590_v21 = vmax.f32 %v822_v1, %v1526_v49  ;;  %v1320_v26 = vpop.permute.xlu1 %1319  ;;  %v442_v1 = vmax.f32 %v1810_v43, %v4741_v50  ;;  %v443_v51 = vmax.f32 %v1813_v59, %v4746_v53  ;;  %v4752_v50 = vld [vmem:[#allocation126_spill] sm:$0xff]  ;;  %v1839_v27 = vld [vmem:[%s4377_s0 + $0x288] sm:$0xff] }
 0x24d   :  { %1708 = vst.msk [vmem:[%s4378_s1 + $0x150] sm:$0xff] %vm1665_vm1, %v1645_v47  ;;  %v1589_v36 = vmax.f32 %v821_v63, %v1525_v18  ;;  %v1318_v35 = vpop.permute.xlu0 %1317  ;;  %v1464_v13 = vsel %vm712_vm0, -inf, %v1320_v26  ;;  %v4787_v39 = vld [vmem:[#allocation167_spill] sm:$0xff] }
 0x24e   :  { %v1463_v6 = vsel %vm712_vm0, -inf, %v1318_v35  ;;  %v1648_v14 = vmax.f32 %v1590_v21, %v1525_v18  ;;  %v1528_v12 = vmax.f32 %v1144_v34, %v1464_v13  ;;  %v827_v16 = vmax.f32 %v442_v1, %v763_v56  ;;  %v1815_v34 = vld [vmem:[%s4377_s0 + $0x340] sm:$0xff]  ;;  %v1816_v21 = vld [vmem:[%s4377_s0 + $0x338] sm:$0xff]  ;;  %v1817_v35 = vld [vmem:[%s4377_s0 + $0x348] sm:$0xff] }
 0x24f   :  { %v1647_v52 = vmax.f32 %v1589_v36, %v1524_v48  ;;  %v1527_v40 = vmax.f32 %v1143_v7, %v1463_v6  ;;  %v4043_v48 = vld [vmem:[%s4377_s0 + $0x310] sm:$0xff]  ;;  %v766_v7 = vsel %vm712_vm0, -inf, %v4749_v24  ;;  %v4750_v36 = vld [vmem:[#allocation174_spill] sm:$0xff]  ;;  %v767_v1 = vsel %vm712_vm0, -inf, %v4752_v50  ;;  %v4763_v50 = vld [vmem:[#allocation129_spill] sm:$0xff] }
 0x250   :  { %v441_v61 = vmax.f32 %v4043_v48, %v4740_v2  ;;  %1711 = vst.msk [vmem:[%s4378_s1 + $0x168] sm:$0xff] %vm1665_vm1, %v1648_v14  ;;  %v1592_v44 = vmax.f32 %v824_v46, %v1528_v12  ;;  %v1326_v28 = vpop.permute.xlu1 %1325  ;;  %v1814_v46 = vld [vmem:[%s4377_s0 + $0x350] sm:$0xff]  ;;  %v1148_v26 = vmax.f32 %v1816_v21, %v4750_v36  ;;  %v828_v14 = vmax.f32 %v443_v51, %v764_v5  ;;  %v1819_v5 = vld [vmem:[%s4377_s0 + $0x360] sm:$0xff] }
 0x251   :  { %1710 = vst.msk [vmem:[%s4378_s1 + $0x160] sm:$0xff] %vm1665_vm1, %v1647_v52  ;;  %v1591_v37 = vmax.f32 %v823_v38, %v1527_v40  ;;  %v1324_v19 = vpop.permute.xlu0 %1323  ;;  %v1467_v63 = vsel %vm712_vm0, -inf, %v1326_v28  ;;  %v445_v9 = vmax.f32 %v1814_v46, %v4747_v0  ;;  %v4751_v38 = vld [vmem:[#allocation177_spill] sm:$0xff] }
 0x252   :  { %v1466_v29 = vsel %vm712_vm0, -inf, %v1324_v19  ;;  %v1650_v57 = vmax.f32 %v1592_v44, %v1527_v40  ;;  %v1531_v18 = vmax.f32 %v1147_v20, %v1467_v63  ;;  %v1149_v4 = vmax.f32 %v1817_v35, %v4751_v38  ;;  %v1818_v20 = vld [vmem:[%s4377_s0 + $0x370] sm:$0xff]  ;;  %v4754_v28 = vld [vmem:[#allocation65_spill] sm:$0xff]  ;;  %v4759_v35 = vld [vmem:[#allocation67_spill] sm:$0xff] }
 0x253   :  { %v1649_v47 = vmax.f32 %v1591_v37, %v1526_v49  ;;  %v444_v49 = vmax.f32 %v1815_v34, %v4748_v33  ;;  %v4103_v13 = vmax.f32 %v1146_v8, %v1466_v29  ;;  %v4753_v44 = vld [vmem:[#allocation64_spill] sm:$0xff]  ;;  %v446_v19 = vmax.f32 %v1819_v5, %v4754_v28  ;;  %v1821_v29 = vld [vmem:[%s4377_s0 + $0x358] sm:$0xff]  ;;  %v1822_v8 = vld [vmem:[%s4377_s0 + $0x368] sm:$0xff] }
 0x254   :  { %1713 = vst.msk [vmem:[%s4378_s1 + $0x178] sm:$0xff] %vm1665_vm1, %v1650_v57  ;;  %v1595_v56 = vmax.f32 %v827_v16, %v1531_v18  ;;  %v1330_v6 = vpop.permute.xlu1 %1329  ;;  %v447_v37 = vmax.f32 %v1818_v20, %v4753_v44  ;;  %v4121_v16 = vld [vmem:[%s4377_s0 + $0x390] sm:$0xff]  ;;  %v830_v63 = vmax.f32 %v445_v9, %v766_v7  ;;  %v1150_v22 = vmax.f32 %v1821_v29, %v4756_v15  ;;  %v4758_v0 = vld [vmem:[#allocation125_spill] sm:$0xff]  ;;  %v1828_v29 = vld [vmem:[%s4377_s0 + $0x3c0] sm:$0xff] }
 0x255   :  { %1712 = vst.msk [vmem:[%s4378_s1 + $0x170] sm:$0xff] %vm1665_vm1, %v1649_v47  ;;  %v1328_v52 = vpop.permute.xlu0 %1327  ;;  %v829_v12 = vmax.f32 %v444_v49, %v765_v31  ;;  %v1469_v40 = vsel %vm712_vm0, -inf, %v1330_v6  ;;  %v449_v31 = vmax.f32 %v4121_v16, %v4755_v55  ;;  %v4757_v47 = vld [vmem:[#allocation179_spill] sm:$0xff]  ;;  %v768_v9 = vsel %vm712_vm0, -inf, %v4758_v0  ;;  %v4765_v15 = vld [vmem:[#allocation70_spill] sm:$0xff] }
 0x256   :  { %v1468_v43 = vsel %vm712_vm0, -inf, %v1328_v52  ;;  %v1652_v54 = vmax.f32 %v1595_v56, %v4103_v13  ;;  %v1533_v3 = vmax.f32 %v1149_v4, %v1469_v40  ;;  %v1151_v57 = vmax.f32 %v1822_v8, %v4757_v47  ;;  %v1824_v4 = vld [vmem:[%s4377_s0 + $0x3b0] sm:$0xff]  ;;  %v4761_v52 = vld [vmem:[#allocation69_spill] sm:$0xff]  ;;  %v4762_v40 = vld [vmem:[#allocation2_spill] sm:$0xff] }
 0x257   :  { %v1532_v30 = vmax.f32 %v1148_v26, %v1468_v43  ;;  %v831_v34 = vmax.f32 %v446_v19, %v767_v1  ;;  %v4144_v26 = vld [vmem:[%s4377_s0 + $0x380] sm:$0xff]  ;;  %v4760_v56 = vld [vmem:[#allocation68_spill] sm:$0xff]  ;;  %v772_v1 = vsel %vm712_vm0, -inf, %v4763_v50  ;;  %v4766_v47 = vld [vmem:[#allocation3_spill] sm:$0xff] }
 0x258   :  { %1716 = vst.msk [vmem:[%s4378_s1 + $0x190] sm:$0xff] %vm1665_vm1, %v1652_v54  ;;  %v1597_v59 = vmax.f32 %v829_v12, %v1533_v3  ;;  %v1334_v51 = vpop.permute.xlu1 %1333  ;;  %v448_v38 = vmax.f32 %v4144_v26, %v4759_v35  ;;  %v451_v6 = vmax.f32 %v1824_v4, %v4760_v56  ;;  %v1826_v12 = vld [vmem:[%s4377_s0 + $0x3d0] sm:$0xff]  ;;  %v1827_v54 = vld [vmem:[%s4377_s0 + $0x378] sm:$0xff]  ;;  %v4773_v50 = vld [vmem:[#allocation183_spill] sm:$0xff] }
 0x259   :  { %v1596_v53 = vmax.f32 %v828_v14, %v1532_v30  ;;  %v1332_v46 = vpop.permute.xlu0 %1331  ;;  %v1471_v33 = vsel %vm712_vm0, -inf, %v1334_v51  ;;  %v453_v43 = vmax.f32 %v1826_v12, %v4762_v40  ;;  %v4181_v8 = vld [vmem:[%s4377_s0 + $0x3f0] sm:$0xff]  ;;  %v1832_v40 = vld [vmem:[%s4377_s0 + $0x3a8] sm:$0xff] }
 0x25a   :  { %v1470_v49 = vsel %vm712_vm0, -inf, %v1332_v46  ;;  %v1654_v7 = vmax.f32 %v1597_v59, %v1532_v30  ;;  %v1535_v21 = vmax.f32 %v1151_v57, %v1471_v33  ;;  %v4764_v30 = vld [vmem:[#allocation178_spill] sm:$0xff]  ;;  %v455_v57 = vmax.f32 %v4181_v8, %v4766_v47  ;;  %v4785_v47 = vld [vmem:[#allocation127_spill] sm:$0xff] }
 0x25b   :  { %v1653_v24 = vmax.f32 %v1596_v53, %v1531_v18  ;;  %v1534_v36 = vmax.f32 %v1150_v22, %v1470_v49  ;;  %v1825_v18 = vld [vmem:[%s4377_s0 + $0x3a0] sm:$0xff]  ;;  %v1152_v20 = vmax.f32 %v1827_v54, %v4764_v30  ;;  %v452_v22 = vmax.f32 %v1828_v29, %v4765_v15  ;;  %v4768_v49 = vld [vmem:[#allocation4_spill] sm:$0xff]  ;;  %v1833_v29 = vld [vmem:[%s4377_s0 + $0x398] sm:$0xff] }
 0x25c   :  { %v450_v14 = vmax.f32 %v1825_v18, %v4761_v52  ;;  %1718 = vst.msk [vmem:[%s4378_s1 + $0x1a0] sm:$0xff] %vm1665_vm1, %v1654_v7  ;;  %v1599_v44 = vmax.f32 %v831_v34, %v1535_v21  ;;  %v1340_v28 = vpop.permute.xlu1 %1339  ;;  %v832_v59 = vmax.f32 %v447_v37, %v768_v9  ;;  %v1830_v33 = vld [vmem:[%s4377_s0 + $0x3e0] sm:$0xff]  ;;  %v4769_v7 = vld [vmem:[#allocation100_spill] sm:$0xff]  ;;  %v836_v56 = vmax.f32 %v451_v6, %v772_v1  ;;  %v4770_v18 = vld [vmem:[#allocation131_spill] sm:$0xff] }
 0x25d   :  { %1717 = vst.msk [vmem:[%s4378_s1 + $0x198] sm:$0xff] %vm1665_vm1, %v1653_v24  ;;  %v1598_v5 = vmax.f32 %v830_v63, %v1534_v36  ;;  %v1336_v19 = vpop.permute.xlu0 %1335  ;;  %v4767_v63 = vld [vmem:[#allocation130_spill] sm:$0xff]  ;;  %v454_v24 = vmax.f32 %v1830_v33, %v4768_v49  ;;  %v746_v4 = vsel %vm712_vm0, -inf, %v4769_v7  ;;  %v774_v37 = vsel %vm712_vm0, -inf, %v4770_v18  ;;  %v4771_v9 = vld [vmem:[#allocation132_spill] sm:$0xff]  ;;  %v1835_v7 = vld [vmem:[%s4377_s0 + $0x3c8] sm:$0xff] }
 0x25e   :  { %v1472_v53 = vsel %vm712_vm0, -inf, %v1336_v19  ;;  %v771_v51 = vsel %vm712_vm0, -inf, %v4767_v63  ;;  %v1656_v0 = vmax.f32 %v1599_v44, %v1534_v36  ;;  %v773_v52 = vsel %vm712_vm0, -inf, %v4771_v9  ;;  %v4772_v36 = vld [vmem:[#allocation182_spill] sm:$0xff]  ;;  %v4774_v15 = vld [vmem:[#allocation180_spill] sm:$0xff] }
 0x25f   :  { %v1655_v46 = vmax.f32 %v1598_v5, %v1533_v3  ;;  %v1536_v34 = vmax.f32 %v1152_v20, %v1472_v53  ;;  %v1831_v3 = vld [vmem:[%s4377_s0 + $0x3b8] sm:$0xff]  ;;  %v1155_v54 = vmax.f32 %v1832_v40, %v4773_v50  ;;  %v835_v20 = vmax.f32 %v450_v14, %v771_v51  ;;  %v4776_v51 = vld [vmem:[#allocation136_spill] sm:$0xff] }
 0x260   :  { %v1156_v12 = vmax.f32 %v1831_v3, %v4772_v36  ;;  %1720 = vst.msk [vmem:[%s4378_s1 + $0x1b0] sm:$0xff] %vm1665_vm1, %v1656_v0  ;;  %v1344_v1 = vpop.permute.xlu1 %1343  ;;  %v1474_v44 = vsel %vm712_vm0, -inf, %v1340_v28  ;;  %v1154_v53 = vmax.f32 %v1833_v29, %v4774_v15  ;;  %v4775_v0 = vld [vmem:[#allocation101_spill] sm:$0xff]  ;;  %v837_v14 = vmax.f32 %v452_v22, %v773_v52  ;;  %v4777_v18 = vld [vmem:[#allocation184_spill] sm:$0xff]  ;;  %v4778_v3 = vld [vmem:[#allocation134_spill] sm:$0xff] }
 0x261   :  { %1719 = vst.msk [vmem:[%s4378_s1 + $0x1a8] sm:$0xff] %vm1665_vm1, %v1655_v46  ;;  %v1600_v6 = vmax.f32 %v832_v59, %v1536_v34  ;;  %v1342_v30 = vpop.permute.xlu0 %1341  ;;  %v1476_v5 = vsel %vm712_vm0, -inf, %v1344_v1  ;;  %v745_v59 = vsel %vm712_vm0, -inf, %v4775_v0  ;;  %v838_v34 = vmax.f32 %v453_v43, %v774_v37  ;;  %v1834_v28 = vld [vmem:[%s4377_s0 + $0x3d8] sm:$0xff]  ;;  %v4781_v29 = vld [vmem:[#allocation110_spill] sm:$0xff] }
 0x262   :  { %v1475_v19 = vsel %vm712_vm0, -inf, %v1342_v30  ;;  %v1540_v46 = vmax.f32 %v1156_v12, %v1476_v5  ;;  %v1158_v49 = vmax.f32 %v1834_v28, %v4776_v51  ;;  %v1157_v9 = vmax.f32 %v1835_v7, %v4777_v18  ;;  %v4779_v12 = vld [vmem:[#allocation135_spill] sm:$0xff]  ;;  %v4780_v5 = vld [vmem:[#allocation109_spill] sm:$0xff] }
 0x263   :  { %v1657_v63 = vmax.f32 %v1600_v6, %v1535_v21  ;;  %v1539_v33 = vmax.f32 %v1155_v54, %v1475_v19  ;;  %v4231_v21 = vmax.f32 %v1154_v53, %v1474_v44  ;;  %v776_v36 = vsel %vm712_vm0, -inf, %v4778_v3  ;;  %v1836_v53 = vld [vmem:[%s4377_s0 + $0x3f8] sm:$0xff] }
 0x264   :  { %v1604_v43 = vmax.f32 %v836_v56, %v1540_v46  ;;  %v1348_v37 = vpop.permute.xlu1 %1347  ;;  %v775_v40 = vsel %vm712_vm0, -inf, %v4779_v12  ;;  %v810_v56 = vmax.f32 %v425_v23, %v746_v4  ;;  %v754_v19 = vsel %vm712_vm0, -inf, %v4780_v5 }
 0x265   :  { %1721 = vst.msk [vmem:[%s4378_s1 + $0x1b8] sm:$0xff] %vm1665_vm1, %v1657_v63  ;;  %v1603_v22 = vmax.f32 %v835_v20, %v1539_v33  ;;  %v1346_v52 = vpop.permute.xlu0 %1345  ;;  %v1478_v50 = vsel %vm712_vm0, -inf, %v1348_v37  ;;  %v4250_v20 = vmax.f32 %v424_v58, %v745_v59  ;;  %v753_v15 = vsel %vm712_vm0, -inf, %v4781_v29  ;;  %v4782_v63 = vld [vmem:[#allocation139_spill] sm:$0xff] }
 0x266   :  { %v1477_v54 = vsel %vm712_vm0, -inf, %v1346_v52  ;;  %v1660_v1 = vmax.f32 %v1604_v43, %v1539_v33  ;;  %v1542_v30 = vmax.f32 %v1158_v49, %v1478_v50  ;;  %v1160_v33 = vmax.f32 %v1836_v53, %v4782_v63  ;;  %v4784_v43 = vld [vmem:[#allocation118_spill] sm:$0xff]  ;;  %v4791_v63 = vld [vmem:[#allocation59_spill] sm:$0xff] }
 0x267   :  { %v1659_v6 = vmax.f32 %v1603_v22, %v4231_v21  ;;  %v1541_v44 = vmax.f32 %v1157_v9, %v1477_v54  ;;  %v1159_v23 = vmax.f32 %v1837_v45, %v4783_v60  ;;  %v840_v0 = vmax.f32 %v455_v57, %v776_v36  ;;  %v1841_v53 = vld [vmem:[%s4377_s0 + $0x300] sm:$0xff]  ;;  %v1842_v60 = vld [vmem:[%s4377_s0 + $0x308] sm:$0xff] }
 0x268   :  { %1725 = vst.msk [vmem:[%s4378_s1 + $0x1d8] sm:$0xff] %vm1665_vm1, %v1660_v1  ;;  %v1606_v17 = vmax.f32 %v838_v34, %v1542_v30  ;;  %v1352_v58 = vpop.permute.xlu1 %1351  ;;  %v839_v59 = vmax.f32 %v454_v24, %v775_v40  ;;  %v818_v34 = vmax.f32 %v433_v10, %v754_v19  ;;  %v762_v8 = vsel %vm712_vm0, -inf, %v4784_v43  ;;  %v1838_v24 = vld [vmem:[%s4377_s0 + $0x208] sm:$0xff]  ;;  %v4789_v19 = vld [vmem:[#allocation128_spill] sm:$0xff] }
 0x269   :  { %1724 = vst.msk [vmem:[%s4378_s1 + $0x1d0] sm:$0xff] %vm1665_vm1, %v1659_v6  ;;  %v1605_v62 = vmax.f32 %v837_v14, %v1541_v44  ;;  %v1350_v4 = vpop.permute.xlu0 %1349  ;;  %v1480_v28 = vsel %vm712_vm0, -inf, %v1352_v58  ;;  %v817_v14 = vmax.f32 %v432_v42, %v753_v15  ;;  %v770_v57 = vsel %vm712_vm0, -inf, %v4785_v47  ;;  %v4788_v1 = vld [vmem:[#allocation119_spill] sm:$0xff] }
 0x26a   :  { %v1479_v51 = vsel %vm712_vm0, -inf, %v1350_v4  ;;  %v1662_v7 = vmax.f32 %v1606_v17, %v1541_v44  ;;  %v1544_v18 = vmax.f32 %v1160_v33, %v1480_v28  ;;  %v1137_v10 = vmax.f32 %v1839_v27, %v4787_v39 }
 0x26b   :  { %v1661_v49 = vmax.f32 %v1605_v62, %v1540_v46  ;;  %v1543_v9 = vmax.f32 %v1159_v23, %v1479_v51  ;;  %v4786_v46 = vld [vmem:[#allocation165_spill] sm:$0xff]  ;;  %v1578_v52 = vmax.f32 %v810_v56, %v3866_v25  ;;  %v1586_v3 = vmax.f32 %v818_v34, %v3977_v41  ;;  %v1840_v41 = vld [vmem:[%s4377_s0 + $0x388] sm:$0xff] }
 0x26c   :  { %v1129_v22 = vmax.f32 %v1838_v24, %v4786_v46  ;;  %1727 = vst.msk [vmem:[%s4378_s1 + $0x1e8] sm:$0xff] %vm1665_vm1, %v1662_v7  ;;  %v1608_v11 = vmax.f32 %v840_v0, %v1544_v18  ;;  %v1306_v42 = vpop.permute.xlu1 %1305  ;;  %v761_v44 = vsel %vm712_vm0, -inf, %v4788_v1  ;;  %v834_v5 = vmax.f32 %v449_v31, %v770_v57  ;;  %v4790_v56 = vld [vmem:[#allocation181_spill] sm:$0xff] }
 0x26d   :  { %1726 = vst.msk [vmem:[%s4378_s1 + $0x1e0] sm:$0xff] %vm1665_vm1, %v1661_v49  ;;  %v1607_v32 = vmax.f32 %v839_v59, %v1543_v9  ;;  %v1290_v37 = vpop.permute.xlu0 %1289  ;;  %v1457_v36 = vsel %vm712_vm0, -inf, %v1306_v42  ;;  %v769_v25 = vsel %vm712_vm0, -inf, %v4789_v19  ;;  %v1153_v29 = vmax.f32 %v1840_v41, %v4790_v56  ;;  %v4792_v23 = vld [vmem:[#allocation173_spill] sm:$0xff] }
 0x26e   :  { %v1449_v12 = vsel %vm712_vm0, -inf, %v1290_v37  ;;  %v1664_v50 = vmax.f32 %v1608_v11, %v1543_v9  ;;  %v1521_v54 = vmax.f32 %v1137_v10, %v1457_v36  ;;  %v440_v33 = vmax.f32 %v1841_v53, %v4791_v63 }
 0x26f   :  { %v1663_v40 = vmax.f32 %v1607_v32, %v1542_v30  ;;  %v1513_v6 = vmax.f32 %v1129_v22, %v1449_v12  ;;  %v826_v45 = vmax.f32 %v441_v61, %v762_v8  ;;  %v1145_v17 = vmax.f32 %v1842_v60, %v4792_v23 }
 0x270   :  { %1729 = vst.msk [vmem:[%s4378_s1 + $0x1f8] sm:$0xff] %vm1665_vm1, %v1664_v50  ;;  %v1585_v16 = vmax.f32 %v817_v14, %v1521_v54  ;;  %v1644_v55 = vmax.f32 %v1586_v3, %v1521_v54  ;;  %v1338_v15 = vpop.permute.xlu1 %1337  ;;  %v833_v58 = vmax.f32 %v448_v38, %v769_v25  ;;  %v1602_v4 = vmax.f32 %v834_v5, %v4231_v21 }
 0x271   :  { %1728 = vst.msk [vmem:[%s4378_s1 + $0x1f0] sm:$0xff] %vm1665_vm1, %v1663_v40  ;;  %v1577_v31 = vmax.f32 %v4250_v20, %v1513_v6  ;;  %v1637_v30 = vmax.f32 %v1578_v52, %v1513_v6  ;;  %v1473_v20 = vsel %vm712_vm0, -inf, %v1338_v15  ;;  %v1322_v62 = vpop.permute.xlu0 %1321  ;;  %v825_v61 = vmax.f32 %v440_v33, %v761_v44 }
 0x272   :  { %1706 = vst.msk [vmem:[%s4378_s1 + $0x140] sm:$0xff] %vm1665_vm1, %v1585_v16  ;;  %1707 = vst.msk [vmem:[%s4378_s1 + $0x148] sm:$0xff] %vm1665_vm1, %v1644_v55  ;;  %v1537_v48 = vmax.f32 %v1153_v29, %v1473_v20  ;;  %v1465_v2 = vsel %vm712_vm0, -inf, %v1322_v62  ;;  %v1594_v26 = vmax.f32 %v826_v45, %v4103_v13 }
 0x273   :  { %1698 = vst.msk [vmem:[%s4378_s1 + $0x100] sm:$0xff] %vm1665_vm1, %v1577_v31  ;;  %1699 = vst.msk [vmem:[%s4378_s1 + $0x108] sm:$0xff] %vm1665_vm1, %v1637_v30  ;;  %v1529_v35 = vmax.f32 %v1145_v17, %v1465_v2 }
 0x274   :  { %v1601_v38 = vmax.f32 %v833_v58, %v1537_v48  ;;  %v1658_v21 = vmax.f32 %v1602_v4, %v1537_v48 }
 0x275   :  { %v1593_v0 = vmax.f32 %v825_v61, %v1529_v35  ;;  %v1651_v59 = vmax.f32 %v1594_v26, %v1529_v35 }
 0x276   :  { %1722 = vst.msk [vmem:[%s4378_s1 + $0x1c0] sm:$0xff] %vm1665_vm1, %v1601_v38  ;;  %1723 = vst.msk [vmem:[%s4378_s1 + $0x1c8] sm:$0xff] %vm1665_vm1, %v1658_v21 }
 0x277   :  { %1714 = vst.msk [vmem:[%s4378_s1 + $0x180] sm:$0xff] %vm1665_vm1, %v1593_v0  ;;  %1715 = vst.msk [vmem:[%s4378_s1 + $0x188] sm:$0xff] %vm1665_vm1, %v1651_v59 }

</bundles_post_ra>
